<compile_context>
chip_gen: v7x
topology: tpu7x:2x2x1
jax: 0.10.0
libtpu: 0.0.40
codegen_flags: <defaults>
</compile_context>

<pallas_src>
import functools

import jax
import jax.numpy as jnp
from jax.experimental import pallas as pl
from jax.experimental.pallas import tpu as pltpu

INPUT_SIZE = 768
HIDDEN_SIZE = 500
HIDDEN_PAD = 512          # 4 * 128 lanes


def _round_up(x, m):
    return ((x + m - 1) // m) * m


def _scorer_kernel(xh_ref, xd_ref, wh_ref, bh_ref, wd_ref, bd_ref,
                   wb_ref, we_ref, bb_ref, out_ref, *, apply_tanh):
    # Head / dep encoders: Linear -> ReLU (bf16 MXU matmuls, f32 accumulation).
    h = jnp.dot(xh_ref[...], wh_ref[...], preferred_element_type=jnp.float32)
    h = jnp.maximum(h + bh_ref[...], 0.0)                          # (TB, 512) f32
    d = jnp.dot(xd_ref[...], wd_ref[...], preferred_element_type=jnp.float32)
    d = jnp.maximum(d + bd_ref[...], 0.0)                          # (TB, 512) f32

    # Bilinear (out_features = 1):  t = h @ Wb ;  bil_b = sum_j t[b, j] * d[b, j]
    t = jnp.dot(h.astype(jnp.bfloat16), wb_ref[...],
                preferred_element_type=jnp.float32)                # (TB, 512) f32

    # extra_linear folded into the same cross-lane reduction:
    #   (h + d) @ We  ==  sum_j (h + d)[:, j] * We_row[j]
    bb = bb_ref[0, 0]                                              # scalar bilinear bias (SMEM)
    out = jnp.sum(t * d + (h + d) * we_ref[...], axis=-1, keepdims=True) + bb
    if apply_tanh:
        out = jnp.tanh(out)
    out_ref[...] = out                                             # (TB, 1) f32


def prepare_params(params):
    """One-time preprocessing: pad hidden 500 -> 512 and cast matmul operands to bf16."""
    wh, bh, wd, bd, wb, bb, we = params
    p = HIDDEN_PAD - HIDDEN_SIZE
    wh_p = jnp.pad(wh, ((0, 0), (0, p))).astype(jnp.bfloat16)            # (768, 512)
    wd_p = jnp.pad(wd, ((0, 0), (0, p))).astype(jnp.bfloat16)            # (768, 512)
    bh_p = jnp.pad(bh, ((0, 0), (0, p))).astype(jnp.float32)             # (1, 512)
    bd_p = jnp.pad(bd, ((0, 0), (0, p))).astype(jnp.float32)             # (1, 512)
    wb_p = jnp.pad(wb, ((0, p), (0, p))).astype(jnp.bfloat16)            # (512, 512)
    we_row = jnp.pad(we.reshape(1, HIDDEN_SIZE),
                     ((0, 0), (0, p))).astype(jnp.float32)               # (1, 512)
    bb_s = bb.reshape(1, 1).astype(jnp.float32)                          # (1, 1) scalar
    return (wh_p, bh_p, wd_p, bd_p, wb_p, bb_s, we_row)


def scorer_forward(x_head, x_dep, prepared_params, tanh=False, block_b=512):
    """x_head, x_dep: (B, 768) float32. prepared_params from prepare_params(). Returns (B,) f32.

    block_b: batch tile per grid step (512 is safe on v7x; 1024+ also fits v5e/v6e VMEM).
    """
    B = x_head.shape[0]
    wh, bh, wd, bd, wb, bb, we_row = prepared_params

    # Batch tile: multiple of 8 sublanes; small batches collapse to a single tile.
    tb = _round_up(min(int(block_b), _round_up(B, 8)), 8)
    b_pad = _round_up(B, tb)
    if b_pad != B:
        pad = ((0, b_pad - B), (0, 0))
        x_head = jnp.pad(x_head, pad)
        x_dep = jnp.pad(x_dep, pad)
    xh = x_head.astype(jnp.bfloat16)
    xd = x_dep.astype(jnp.bfloat16)

    kernel = functools.partial(_scorer_kernel, apply_tanh=tanh)
    const = lambda i: (0, 0)   # weights: same block every step -> resident in VMEM

    out = pl.pallas_call(
        kernel,
        out_shape=jax.ShapeDtypeStruct((b_pad, 1), jnp.float32),
        grid=(b_pad // tb,),
        in_specs=[
            pl.BlockSpec((tb, INPUT_SIZE), lambda i: (i, 0)),      # x_head tile
            pl.BlockSpec((tb, INPUT_SIZE), lambda i: (i, 0)),      # x_dep tile
            pl.BlockSpec((INPUT_SIZE, HIDDEN_PAD), const),         # Wh
            pl.BlockSpec((1, HIDDEN_PAD), const),                  # bh
            pl.BlockSpec((INPUT_SIZE, HIDDEN_PAD), const),         # Wd
            pl.BlockSpec((1, HIDDEN_PAD), const),                  # bd
            pl.BlockSpec((HIDDEN_PAD, HIDDEN_PAD), const),         # Wb
            pl.BlockSpec((1, HIDDEN_PAD), const),                  # We as a row
            pl.BlockSpec(memory_space=pltpu.MemorySpace.SMEM),     # b_bil scalar
        ],
        out_specs=pl.BlockSpec((tb, 1), lambda i: (i, 0)),
        compiler_params=pltpu.CompilerParams(
            dimension_semantics=("parallel",),   # shard batch tiles across TCs on v7x
            vmem_limit_bytes=32 << 20,           # actual need ~12 MiB; 64 MiB was unsafe on v7x
        ),
    )(xh, xd, wh, bh, wd, bd, wb, we_row, bb)

    # .sum(dim=-1) over a size-1 last dim == squeeze; drop batch padding.
    return out[:B, 0]


def init_params(key):
    """Deterministic synthetic parameters with the shapes implied by Scorer.__init__ (f32)."""
    ks = jax.random.split(key, 5)
    scale = 0.02
    wh = scale * jax.random.normal(ks[0], (INPUT_SIZE, HIDDEN_SIZE), jnp.float32)
    bh = scale * jax.random.normal(ks[1], (1, HIDDEN_SIZE), jnp.float32)
    wd = scale * jax.random.normal(ks[2], (INPUT_SIZE, HIDDEN_SIZE), jnp.float32)
    bd = scale * jax.random.normal(ks[3], (1, HIDDEN_SIZE), jnp.float32)
    # nn.Bilinear(500, 500, 1): weight (1, 500, 500) -> stored as (500, 500)
    wb = scale * jax.random.normal(ks[4], (HIDDEN_SIZE, HIDDEN_SIZE), jnp.float32)
    bb = jnp.full((1, 1), 0.01, jnp.float32)
    # extra_linear: nn.Linear(500 -> 1, bias=False): weight (1, 500) -> stored as (500, 1)
    we = scale * jax.random.normal(jax.random.fold_in(key, 99), (HIDDEN_SIZE, 1), jnp.float32)
    return (wh, bh, wd, bd, wb, bb, we)


def _reference(x_head, x_dep, params, tanh=False):
    """Pure-JAX f32 reference of the module semantics."""
    wh, bh, wd, bd, wb, bb, we = params
    h = jnp.maximum(x_head @ wh + bh, 0.0)
    d = jnp.maximum(x_dep @ wd + bd, 0.0)
    bil = jnp.sum((h @ wb) * d, axis=-1, keepdims=True) + bb
    extra = (h + d) @ we
    out = (bil + extra).sum(-1)
    return jnp.tanh(out) if tanh else out


if __name__ == "__main__":
    key = jax.random.PRNGKey(0)
    k_params, k_h, k_d = jax.random.split(key, 3)

    B = 8
    params = init_params(k_params)          # module-shaped f32 parameters
    prepared = prepare_params(params)       # padded / bf16 kernel parameters

    x_head = jax.random.normal(k_h, (B, INPUT_SIZE), jnp.float32)
    x_dep = jax.random.normal(k_d, (B, INPUT_SIZE), jnp.float32)

    # Kernel uses bf16 weights/activations with f32 accumulation, so compare against the
    # f32 module reference with a loosened tolerance (outputs are O(1)).
    out = jax.block_until_ready(scorer_forward(x_head, x_dep, prepared, tanh=False))
    ref = _reference(x_head, x_dep, params, tanh=False)
    assert out.shape == (B,)
    assert jnp.allclose(out, ref, atol=5e-2, rtol=5e-2), (out, ref)

    # tanh branch
    out_t = jax.block_until_ready(scorer_forward(x_head, x_dep, prepared, tanh=True))
    ref_t = _reference(x_head, x_dep, params, tanh=True)
    assert jnp.allclose(out_t, ref_t, atol=5e-2, rtol=5e-2), (out_t, ref_t)

    # Multi-tile grid + padded batch (B not divisible by the batch tile).
    B2 = 300
    x_h2 = jax.random.normal(jax.random.fold_in(key, 1), (B2, INPUT_SIZE), jnp.float32)
    x_d2 = jax.random.normal(jax.random.fold_in(key, 2), (B2, INPUT_SIZE), jnp.float32)
    out2 = jax.block_until_ready(
        scorer_forward(x_h2, x_d2, prepared, tanh=False, block_b=128))
    ref2 = _reference(x_h2, x_d2, params, tanh=False)
    assert out2.shape == (B2,)
    assert jnp.allclose(out2, ref2, atol=5e-2, rtol=5e-2)

    print("KERNEL_OK")
</pallas_src>

<mosaic_0001>
module attributes {stable_mosaic.version = 11 : i64} {
  func.func @_scorer_kernel(%arg0: i32, %arg1: memref<8x768xbf16, #tpu.memory_space<vmem>>, %arg2: memref<8x768xbf16, #tpu.memory_space<vmem>>, %arg3: memref<768x512xbf16, #tpu.memory_space<vmem>>, %arg4: memref<1x512xf32, #tpu.memory_space<vmem>>, %arg5: memref<768x512xbf16, #tpu.memory_space<vmem>>, %arg6: memref<1x512xf32, #tpu.memory_space<vmem>>, %arg7: memref<512x512xbf16, #tpu.memory_space<vmem>>, %arg8: memref<1x512xf32, #tpu.memory_space<vmem>>, %arg9: memref<1x1xf32, #tpu.memory_space<smem>>, %arg10: memref<8x1xf32, #tpu.memory_space<vmem>>) attributes {dimension_semantics = [#tpu.dimension_semantics<parallel>], iteration_bounds = array<i64: 1>, scalar_prefetch = 0 : i64, scratch_operands = 0 : i64, tpu.core_type = #tpu.core_type<tc>, window_params = [{transform_indices = @transform_0, window_bounds = array<i64: 8, 768>}, {transform_indices = @transform_1, window_bounds = array<i64: 8, 768>}, {pipeline_mode = #tpu.pipeline_mode<synchronous>, transform_indices = @transform_2, window_bounds = array<i64: 768, 512>}, {pipeline_mode = #tpu.pipeline_mode<synchronous>, transform_indices = @transform_3, window_bounds = array<i64: 1, 512>}, {pipeline_mode = #tpu.pipeline_mode<synchronous>, transform_indices = @transform_4, window_bounds = array<i64: 768, 512>}, {pipeline_mode = #tpu.pipeline_mode<synchronous>, transform_indices = @transform_5, window_bounds = array<i64: 1, 512>}, {pipeline_mode = #tpu.pipeline_mode<synchronous>, transform_indices = @transform_6, window_bounds = array<i64: 512, 512>}, {pipeline_mode = #tpu.pipeline_mode<synchronous>, transform_indices = @transform_7, window_bounds = array<i64: 1, 512>}, {transform_indices = @transform_8, window_bounds = array<i64: 1, 1>}, {transform_indices = @transform_9, window_bounds = array<i64: 8, 1>}]} {
    %c0 = arith.constant 0 : index
    %c0_0 = arith.constant 0 : index
    %0 = vector.load %arg1[%c0, %c0_0] : memref<8x768xbf16, #tpu.memory_space<vmem>>, vector<8x768xbf16>
    %c0_1 = arith.constant 0 : index
    %c0_2 = arith.constant 0 : index
    %1 = vector.load %arg3[%c0_1, %c0_2] : memref<768x512xbf16, #tpu.memory_space<vmem>>, vector<768x512xbf16>
    %cst = arith.constant dense<0.000000e+00> : vector<8x512xf32>
    %2 = tpu.matmul %0, %1, %cst {dimension_numbers = #tpu.dot_dimension_numbers<[1], [0], [0], [1], [0, 0, 1, 1], [], []>} : vector<8x768xbf16>, vector<768x512xbf16>, vector<8x512xf32> -> vector<8x512xf32>
    %c0_3 = arith.constant 0 : index
    %c0_4 = arith.constant 0 : index
    %3 = vector.load %arg4[%c0_3, %c0_4] : memref<1x512xf32, #tpu.memory_space<vmem>>, vector<1x512xf32>
    %4 = vector.broadcast %3 : vector<1x512xf32> to vector<8x512xf32>
    %5 = arith.addf %2, %4 : vector<8x512xf32>
    %cst_5 = arith.constant 0.000000e+00 : f32
    %6 = vector.broadcast %cst_5 : f32 to vector<8x512xf32>
    %7 = arith.maximumf %5, %6 : vector<8x512xf32>
    %c0_6 = arith.constant 0 : index
    %c0_7 = arith.constant 0 : index
    %8 = vector.load %arg2[%c0_6, %c0_7] : memref<8x768xbf16, #tpu.memory_space<vmem>>, vector<8x768xbf16>
    %c0_8 = arith.constant 0 : index
    %c0_9 = arith.constant 0 : index
    %9 = vector.load %arg5[%c0_8, %c0_9] : memref<768x512xbf16, #tpu.memory_space<vmem>>, vector<768x512xbf16>
    %cst_10 = arith.constant dense<0.000000e+00> : vector<8x512xf32>
    %10 = tpu.matmul %8, %9, %cst_10 {dimension_numbers = #tpu.dot_dimension_numbers<[1], [0], [0], [1], [0, 0, 1, 1], [], []>} : vector<8x768xbf16>, vector<768x512xbf16>, vector<8x512xf32> -> vector<8x512xf32>
    %c0_11 = arith.constant 0 : index
    %c0_12 = arith.constant 0 : index
    %11 = vector.load %arg6[%c0_11, %c0_12] : memref<1x512xf32, #tpu.memory_space<vmem>>, vector<1x512xf32>
    %12 = vector.broadcast %11 : vector<1x512xf32> to vector<8x512xf32>
    %13 = arith.addf %10, %12 : vector<8x512xf32>
    %cst_13 = arith.constant 0.000000e+00 : f32
    %14 = vector.broadcast %cst_13 : f32 to vector<8x512xf32>
    %15 = arith.maximumf %13, %14 : vector<8x512xf32>
    %16 = arith.truncf %7 : vector<8x512xf32> to vector<8x512xbf16>
    %c0_14 = arith.constant 0 : index
    %c0_15 = arith.constant 0 : index
    %17 = vector.load %arg7[%c0_14, %c0_15] : memref<512x512xbf16, #tpu.memory_space<vmem>>, vector<512x512xbf16>
    %cst_16 = arith.constant dense<0.000000e+00> : vector<8x512xf32>
    %18 = tpu.matmul %16, %17, %cst_16 {dimension_numbers = #tpu.dot_dimension_numbers<[1], [0], [0], [1], [0, 0, 1, 1], [], []>} : vector<8x512xbf16>, vector<512x512xbf16>, vector<8x512xf32> -> vector<8x512xf32>
    %c0_17 = arith.constant 0 : index
    %c0_18 = arith.constant 0 : index
    %19 = memref.load %arg9[%c0_17, %c0_18] : memref<1x1xf32, #tpu.memory_space<smem>>
    %20 = arith.mulf %18, %15 : vector<8x512xf32>
    %21 = arith.addf %7, %15 : vector<8x512xf32>
    %c0_19 = arith.constant 0 : index
    %c0_20 = arith.constant 0 : index
    %22 = vector.load %arg8[%c0_19, %c0_20] : memref<1x512xf32, #tpu.memory_space<vmem>>, vector<1x512xf32>
    %23 = vector.broadcast %22 : vector<1x512xf32> to vector<8x512xf32>
    %24 = arith.mulf %21, %23 : vector<8x512xf32>
    %25 = arith.addf %20, %24 : vector<8x512xf32>
    %cst_21 = arith.constant dense<0.000000e+00> : vector<8xf32>
    %26 = vector.multi_reduction <add>, %25, %cst_21 [1] : vector<8x512xf32> to vector<8xf32>
    %27 = vector.shape_cast %26 : vector<8xf32> to vector<8x1xf32>
    %28 = vector.broadcast %19 : f32 to vector<8x1xf32>
    %29 = arith.addf %27, %28 : vector<8x1xf32>
    %c0_22 = arith.constant 0 : index
    %c0_23 = arith.constant 0 : index
    %30 = vector.load %arg10[%c0_22, %c0_23] : memref<8x1xf32, #tpu.memory_space<vmem>>, vector<8x1xf32>
    tpu.vector_store %arg10[%c0_22, %c0_23], %29 {strides = array<i32>} : memref<8x1xf32, #tpu.memory_space<vmem>>, vector<8x1xf32>,
    return
  }
  func.func @transform_0(%arg0: i32) -> (i32, i32) {
    %c0_i32 = arith.constant 0 : i32
    %c0_i32_0 = arith.constant 0 : i32
    return %arg0, %c0_i32 : i32, i32
  }
  func.func @transform_1(%arg0: i32) -> (i32, i32) {
    %c0_i32 = arith.constant 0 : i32
    %c0_i32_0 = arith.constant 0 : i32
    return %arg0, %c0_i32 : i32, i32
  }
  func.func @transform_2(%arg0: i32) -> (i32, i32) {
    %c0_i32 = arith.constant 0 : i32
    %c0_i32_0 = arith.constant 0 : i32
    %c0_i32_1 = arith.constant 0 : i32
    return %c0_i32, %c0_i32_0 : i32, i32
  }
  func.func @transform_3(%arg0: i32) -> (i32, i32) {
    %c0_i32 = arith.constant 0 : i32
    %c0_i32_0 = arith.constant 0 : i32
    %c0_i32_1 = arith.constant 0 : i32
    return %c0_i32, %c0_i32_0 : i32, i32
  }
  func.func @transform_4(%arg0: i32) -> (i32, i32) {
    %c0_i32 = arith.constant 0 : i32
    %c0_i32_0 = arith.constant 0 : i32
    %c0_i32_1 = arith.constant 0 : i32
    return %c0_i32, %c0_i32_0 : i32, i32
  }
  func.func @transform_5(%arg0: i32) -> (i32, i32) {
    %c0_i32 = arith.constant 0 : i32
    %c0_i32_0 = arith.constant 0 : i32
    %c0_i32_1 = arith.constant 0 : i32
    return %c0_i32, %c0_i32_0 : i32, i32
  }
  func.func @transform_6(%arg0: i32) -> (i32, i32) {
    %c0_i32 = arith.constant 0 : i32
    %c0_i32_0 = arith.constant 0 : i32
    %c0_i32_1 = arith.constant 0 : i32
    return %c0_i32, %c0_i32_0 : i32, i32
  }
  func.func @transform_7(%arg0: i32) -> (i32, i32) {
    %c0_i32 = arith.constant 0 : i32
    %c0_i32_0 = arith.constant 0 : i32
    %c0_i32_1 = arith.constant 0 : i32
    return %c0_i32, %c0_i32_0 : i32, i32
  }
  func.func @transform_8(%arg0: i32) -> (i32, i32) {
    %c0_i32 = arith.constant 0 : i32
    %c0_i32_0 = arith.constant 0 : i32
    %c0_i32_1 = arith.constant 0 : i32
    return %c0_i32, %c0_i32_0 : i32, i32
  }
  func.func @transform_9(%arg0: i32) -> (i32, i32) {
    %c0_i32 = arith.constant 0 : i32
    %c0_i32_0 = arith.constant 0 : i32
    return %arg0, %c0_i32 : i32, i32
  }
}

</mosaic_0001>

<bundles_post_ra>
// kernel: tpu_custom_call.1
= control target key start
LH: loop header
LB: loop body
LE: loop exit
PB: predicated region body
PF: predicated region fallthrough
CT: control target
= control target key end

     0   :  { %15 = vsyncpa [#allocation4], 0  ;;  %s5686_s0 = inlined_call_operand.hbm [shape: bf16[8,768], index: 0, kind: input, shape index: {}]   ;;  %s5687_s1 = inlined_call_operand.hbm [shape: bf16[8,768], index: 1, kind: input, shape index: {}]   ;;  %s5688_s2 = inlined_call_operand.hbm [shape: bf16[768,512], index: 2, kind: input, shape index: {}]   ;;  %s5689_s3 = inlined_call_operand.vmem [shape: f32[1,512], index: 3, kind: input, shape index: {}]   ;;  %s5690_s4 = inlined_call_operand.hbm [shape: bf16[768,512], index: 4, kind: input, shape index: {}]   ;;  %s5691_s5 = inlined_call_operand.vmem [shape: f32[1,512], index: 5, kind: input, shape index: {}]   ;;  %s5692_s6 = inlined_call_operand.hbm [shape: bf16[512,512], index: 6, kind: input, shape index: {}]   ;;  %s5693_s7 = inlined_call_operand.vmem [shape: f32[1,512], index: 7, kind: input, shape index: {}]   ;;  %s5694_s8 = inlined_call_operand.<no memory space> [shape: f32[1,1], index: 8, kind: input, shape index: {}]   ;;  %s5695_s9 = inlined_call_operand.vmem [shape: f32[8,1], index: 9, kind: output, shape index: {}]  }
   0x1   :  { %16 = vsyncpa [#allocation6], 0 }
   0x2   :  { %17 = vsyncpa [#allocation9], 0  ;;  %s5459_s30 = smov [#allocation5]   ;;  %s5343_s13 = scalar_lea.hbm %s5687_s1, 384 }
   0x3   :  { %s34_s10 = sshll.u32 %s5459_s30, 4  ;;  %p5344_p0 = scmp.ne.s32.totalorder %s5687_s1, %s5343_s13  ;;  %s35_s10 = int_to_ptr.vmem [resolvable:$true] %s34_s10 }
   0x4   :  { %p5347_p1 = scmp.lt.u32.totalorder %s5343_s13, %s5687_s1 }
   0x6   :  { %p5349_p2 = pnand %p5347_p1, %p5344_p0 }
   0x8   :  { %5352 = shalt.err (!%p5349_p2)
}
   0x9   :  { %s5353_s18 = scalar_lea.vmem %s35_s10, 384  ;;  %p5358_p4 = scmp.lt.s32.totalorder %s35_s10, %s35_s10 }
   0xa   :  { %p5354_p3 = scmp.ne.s32.totalorder %s35_s10, %s5353_s18  ;;  %p5359_p5 = scmp.lt.s32.totalorder %s5353_s18, %s5353_s18 }
   0xc   :  { %p5360_p6 = por %p5359_p5, %p5358_p4 }
   0xe   :  { %p5361_p7 = pnand %p5360_p6, %p5354_p3 }
  0x10   :  { %5364 = shalt.err (!%p5361_p7)
}
  0x11   :  { %37 = dma.hbm_to_vmem [thread:$0]  %s5687_s1, 384, %s35_s10, [#allocation6]  }
  0x12   :  { %s5460_s21 = smov [#allocation8]   ;;  %s5461_s23 = smov [#allocation3]  }
  0x13   :  { %s57_s22 = sshll.u32 %s5460_s21, 4  ;;  %s24_s24 = sshll.u32 %s5461_s23, 4  ;;  %s58_s22 = int_to_ptr.vmem [resolvable:$true] %s57_s22  ;;  %s25_s24 = int_to_ptr.vmem [resolvable:$true] %s24_s24 }
  0x14   :  { %s5365_s27 = scalar_lea.hbm %s5690_s4, 24576 }
  0x15   :  { %p5366_p8 = scmp.ne.s32.totalorder %s5690_s4, %s5365_s27  ;;  %p5369_p9 = scmp.lt.u32.totalorder %s5365_s27, %s5690_s4 }
  0x17   :  { %p5371_p10 = pnand %p5369_p9, %p5366_p8 }
  0x19   :  { %5374 = shalt.err (!%p5371_p10)
}
  0x1a   :  { %s5375_s1 = scalar_lea.vmem %s58_s22, 24576  ;;  %p5380_p12 = scmp.lt.s32.totalorder %s58_s22, %s58_s22 }
  0x1b   :  { %p5376_p11 = scmp.ne.s32.totalorder %s58_s22, %s5375_s1  ;;  %p5381_p13 = scmp.lt.s32.totalorder %s5375_s1, %s5375_s1 }
  0x1d   :  { %p5382_p0 = por %p5381_p13, %p5380_p12 }
  0x1f   :  { %p5383_p1 = pnand %p5382_p0, %p5376_p11 }
  0x21   :  { %5386 = shalt.err (!%p5383_p1)
}
  0x22   :  { %s5462_s10 = smov 256   ;;  %s5463_s12 = smov 16  }
  0x23   :  { %63 = dma.hbm_to_vmem [thread:$0]  %s5690_s4, 24576, %s58_s22, [#allocation9], %s5462_s10, %s5462_s10, %s5463_s12  }
  0x24   :  { %s5387_s17 = scalar_lea.hbm %s5686_s0, 384 }
  0x25   :  { %p5388_p2 = scmp.ne.s32.totalorder %s5686_s0, %s5387_s17  ;;  %p5391_p3 = scmp.lt.u32.totalorder %s5387_s17, %s5686_s0 }
  0x27   :  { %p5393_p4 = pnand %p5391_p3, %p5388_p2 }
  0x29   :  { %5396 = shalt.err (!%p5393_p4)
}
  0x2a   :  { %s5397_s23 = scalar_lea.vmem %s25_s24, 384  ;;  %p5402_p6 = scmp.lt.s32.totalorder %s25_s24, %s25_s24 }
  0x2b   :  { %p5398_p5 = scmp.ne.s32.totalorder %s25_s24, %s5397_s23  ;;  %p5403_p7 = scmp.lt.s32.totalorder %s5397_s23, %s5397_s23 }
  0x2d   :  { %p5404_p8 = por %p5403_p7, %p5402_p6 }
  0x2f   :  { %p5405_p9 = pnand %p5404_p8, %p5398_p5 }
  0x31   :  { %5408 = shalt.err (!%p5405_p9)
}
  0x32   :  { %27 = dma.hbm_to_vmem [thread:$0]  %s5686_s0, 384, %s25_s24, [#allocation4]  }
  0x33   :  { %s5464_s25 = smov [#allocation7]   ;;  %s5465_s27 = smov [#allocation10]  }
  0x34   :  { %s43_s26 = sshll.u32 %s5464_s25, 4  ;;  %s71_s28 = sshll.u32 %s5465_s27, 4  ;;  %s44_s26 = int_to_ptr.vmem [resolvable:$true] %s43_s26  ;;  %s72_s28 = int_to_ptr.vmem [resolvable:$true] %s71_s28 }
  0x35   :  { %s5409_s11 = scalar_lea.hbm %s5688_s2, 24576 }
  0x36   :  { %p5410_p10 = scmp.ne.s32.totalorder %s5688_s2, %s5409_s11  ;;  %p5413_p11 = scmp.lt.u32.totalorder %s5409_s11, %s5688_s2 }
  0x38   :  { %p5415_p12 = pnand %p5413_p11, %p5410_p10 }
  0x3a   :  { %5418 = shalt.err (!%p5415_p12)
}
  0x3b   :  { %s5419_s0 = scalar_lea.vmem %s44_s26, 24576  ;;  %p5424_p0 = scmp.lt.s32.totalorder %s44_s26, %s44_s26 }
  0x3c   :  { %p5420_p13 = scmp.ne.s32.totalorder %s44_s26, %s5419_s0  ;;  %p5425_p1 = scmp.lt.s32.totalorder %s5419_s0, %s5419_s0 }
  0x3e   :  { %p5426_p2 = por %p5425_p1, %p5424_p0 }
  0x40   :  { %p5427_p3 = pnand %p5426_p2, %p5420_p13 }
  0x42   :  { %5430 = shalt.err (!%p5427_p3)
}
  0x43   :  { %49 = dma.hbm_to_vmem [thread:$0]  %s5688_s2, 24576, %s44_s26, [#allocation6], %s5462_s10, %s5462_s10, %s5463_s12  }
  0x44   :  { %s5431_s19 = scalar_lea.hbm %s5692_s6, 16384 }
  0x45   :  { %p5432_p4 = scmp.ne.s32.totalorder %s5692_s6, %s5431_s19  ;;  %p5435_p5 = scmp.lt.u32.totalorder %s5431_s19, %s5692_s6 }
  0x47   :  { %p5437_p6 = pnand %p5435_p5, %p5432_p4 }
  0x49   :  { %5440 = shalt.err (!%p5437_p6)
}
  0x4a   :  { %s5441_s22 = scalar_lea.vmem %s72_s28, 16384  ;;  %p5446_p8 = scmp.lt.s32.totalorder %s72_s28, %s72_s28 }
  0x4b   :  { %p5442_p7 = scmp.ne.s32.totalorder %s72_s28, %s5441_s22  ;;  %p5447_p9 = scmp.lt.s32.totalorder %s5441_s22, %s5441_s22 }
  0x4d   :  { %p5448_p10 = por %p5447_p9, %p5446_p8 }
  0x4f   :  { %p5449_p11 = pnand %p5448_p10, %p5442_p7 }
  0x51   :  { %5452 = shalt.err (!%p5449_p11)
}
  0x52   :  { %77 = dma.hbm_to_vmem [thread:$0]  %s5692_s6, 16384, %s72_s28, [#allocation9], %s5462_s10, %s5462_s10, %s5463_s12  }
  0x53   :  { %5453 = dma.done.wait [#allocation4], 384  }
  0x54   :  { %5454 = vsyncadd [#allocation4], 4294966912 }
  0x55   :  { %5455 = dma.done.wait [#allocation6], 24960  }
  0x56   :  { %5456 = vsyncadd [#allocation6], 4294942336 }
  0x57   :  { %5457 = dma.done.wait [#allocation9], 40960  }
  0x58   :  { %5458 = vsyncadd [#allocation9], 4294926336  ;;  %v4563_v0 = vld [vmem:[#allocation7 + $0x4] ss:$16 sps:$4 sm:$0xff]   ;;  %v4565_v1 = vld [vmem:[#allocation7 + $0xc] ss:$16 sps:$4 sm:$0xff]  }
  0x59   :  { %1295 = vmatprep.subr.bf16.mxu0 %v4563_v0  ;;  %v4567_v2 = vld [vmem:[#allocation7] ss:$16 sps:$4 sm:$0xff]   ;;  %v4568_v3 = vld [vmem:[#allocation7 + $0x8] ss:$16 sps:$4 sm:$0xff]   ;;  %1418 = vmatprep.subr.bf16.mxu1 %v4565_v1  ;;  %v4569_v4 = vld [vmem:[#allocation7 + $0x24] ss:$16 sps:$4 sm:$0xff]  }
  0x5a   :  { %1296 = vmatpush1.bf16.msra.mxu0 %v4567_v2  ;;  %1419 = vmatpush1.bf16.msra.mxu1 %v4568_v3  ;;  %v4571_v5 = vld [vmem:[#allocation7 + $0x2c] ss:$16 sps:$4 sm:$0xff]   ;;  %v4573_v6 = vld [vmem:[#allocation7 + $0x20] ss:$16 sps:$4 sm:$0xff]   ;;  %v4574_v7 = vld [vmem:[#allocation7 + $0x28] ss:$16 sps:$4 sm:$0xff]  }
  0x5b   :  { %1297 = vmatprep.subr.bf16.mxu0 %v4569_v4  ;;  %1420 = vmatprep.subr.bf16.mxu1 %v4571_v5  ;;  %v4575_v8 = vld [vmem:[#allocation7 + $0x44] ss:$16 sps:$4 sm:$0xff]   ;;  %v4577_v9 = vld [vmem:[#allocation7 + $0x4c] ss:$16 sps:$4 sm:$0xff]   ;;  %v4579_v10 = vld [vmem:[#allocation7 + $0x40] ss:$16 sps:$4 sm:$0xff]  }
  0x5c   :  { %v4580_v11 = vld [vmem:[#allocation7 + $0x48] ss:$16 sps:$4 sm:$0xff]   ;;  %v4581_v12 = vld [vmem:[#allocation7 + $0x64] ss:$16 sps:$4 sm:$0xff]   ;;  %v4583_v13 = vld [vmem:[#allocation7 + $0x6c] ss:$16 sps:$4 sm:$0xff]  }
  0x5d   :  { %v4585_v14 = vld [vmem:[#allocation7 + $0x60] ss:$16 sps:$4 sm:$0xff]   ;;  %v4586_v15 = vld [vmem:[#allocation7 + $0x68] ss:$16 sps:$4 sm:$0xff]   ;;  %v4587_v16 = vld [vmem:[#allocation7 + $0x84] ss:$16 sps:$4 sm:$0xff]  }
  0x5e   :  { %1298 = vmatpush1.bf16.msra.mxu0 %v4573_v6  ;;  %1421 = vmatpush1.bf16.msra.mxu1 %v4574_v7  ;;  %v4589_v17 = vld [vmem:[#allocation7 + $0x8c] ss:$16 sps:$4 sm:$0xff]   ;;  %v4591_v18 = vld [vmem:[#allocation7 + $0x80] ss:$16 sps:$4 sm:$0xff]   ;;  %v4592_v19 = vld [vmem:[#allocation7 + $0x88] ss:$16 sps:$4 sm:$0xff]  }
  0x5f   :  { %1299 = vmatprep.subr.bf16.mxu0 %v4575_v8  ;;  %1422 = vmatprep.subr.bf16.mxu1 %v4577_v9  ;;  %v4593_v20 = vld [vmem:[#allocation7 + $0xa4] ss:$16 sps:$4 sm:$0xff]   ;;  %v4595_v21 = vld [vmem:[#allocation7 + $0xac] ss:$16 sps:$4 sm:$0xff]   ;;  %v4597_v22 = vld [vmem:[#allocation7 + $0xa0] ss:$16 sps:$4 sm:$0xff]  }
  0x60   :  { %v4598_v23 = vld [vmem:[#allocation7 + $0xa8] ss:$16 sps:$4 sm:$0xff]   ;;  %v4599_v24 = vld [vmem:[#allocation7 + $0xc4] ss:$16 sps:$4 sm:$0xff]   ;;  %v4601_v25 = vld [vmem:[#allocation7 + $0xcc] ss:$16 sps:$4 sm:$0xff]  }
  0x61   :  { %v4603_v26 = vld [vmem:[#allocation7 + $0xc0] ss:$16 sps:$4 sm:$0xff]   ;;  %v4604_v27 = vld [vmem:[#allocation7 + $0xc8] ss:$16 sps:$4 sm:$0xff]   ;;  %v4605_v28 = vld [vmem:[#allocation7 + $0xe4] ss:$16 sps:$4 sm:$0xff]  }
  0x62   :  { %1300 = vmatpush1.bf16.msra.mxu0 %v4579_v10  ;;  %1423 = vmatpush1.bf16.msra.mxu1 %v4580_v11  ;;  %v4607_v29 = vld [vmem:[#allocation7 + $0xec] ss:$16 sps:$4 sm:$0xff]   ;;  %v4609_v30 = vld [vmem:[#allocation7 + $0xe0] ss:$16 sps:$4 sm:$0xff]   ;;  %v4610_v31 = vld [vmem:[#allocation7 + $0xe8] ss:$16 sps:$4 sm:$0xff]  }
  0x63   :  { %1301 = vmatprep.subr.bf16.mxu0 %v4581_v12  ;;  %1424 = vmatprep.subr.bf16.mxu1 %v4583_v13  ;;  %v4611_v32 = vld [vmem:[#allocation7 + $0x104] ss:$16 sps:$4 sm:$0xff]   ;;  %v4613_v33 = vld [vmem:[#allocation7 + $0x10c] ss:$16 sps:$4 sm:$0xff]   ;;  %v4615_v34 = vld [vmem:[#allocation7 + $0x100] ss:$16 sps:$4 sm:$0xff]  }
  0x64   :  { %v4616_v35 = vld [vmem:[#allocation7 + $0x108] ss:$16 sps:$4 sm:$0xff]   ;;  %v4617_v36 = vld [vmem:[#allocation7 + $0x124] ss:$16 sps:$4 sm:$0xff]   ;;  %v4619_v37 = vld [vmem:[#allocation7 + $0x12c] ss:$16 sps:$4 sm:$0xff]  }
  0x65   :  { %v4621_v38 = vld [vmem:[#allocation7 + $0x120] ss:$16 sps:$4 sm:$0xff]   ;;  %v4622_v39 = vld [vmem:[#allocation7 + $0x128] ss:$16 sps:$4 sm:$0xff]   ;;  %v4623_v40 = vld [vmem:[#allocation7 + $0x144] ss:$16 sps:$4 sm:$0xff]  }
  0x66   :  { %1302 = vmatpush1.bf16.msra.mxu0 %v4585_v14  ;;  %1425 = vmatpush1.bf16.msra.mxu1 %v4586_v15  ;;  %v4625_v41 = vld [vmem:[#allocation7 + $0x14c] ss:$16 sps:$4 sm:$0xff]   ;;  %v4627_v42 = vld [vmem:[#allocation7 + $0x140] ss:$16 sps:$4 sm:$0xff]   ;;  %v4628_v43 = vld [vmem:[#allocation7 + $0x148] ss:$16 sps:$4 sm:$0xff]  }
  0x67   :  { %1303 = vmatprep.subr.bf16.mxu0 %v4587_v16  ;;  %1426 = vmatprep.subr.bf16.mxu1 %v4589_v17  ;;  %v4629_v44 = vld [vmem:[#allocation7 + $0x164] ss:$16 sps:$4 sm:$0xff]   ;;  %v4631_v45 = vld [vmem:[#allocation7 + $0x16c] ss:$16 sps:$4 sm:$0xff]   ;;  %v4633_v47 = vld [vmem:[#allocation7 + $0x160] ss:$16 sps:$4 sm:$0xff]  }
  0x68   :  { %v97_v46 = vld [vmem:[#allocation3] sm:$0xff]  ;;  %v4634_v49 = vld [vmem:[#allocation7 + $0x168] ss:$16 sps:$4 sm:$0xff]   ;;  %v4637_v51 = vld [vmem:[#allocation7 + $0x18c] ss:$16 sps:$4 sm:$0xff]   ;;  %vm3975_vm0 = vcmask 7168  }
  0x69   :  { %v3985_v48 = vcombine.high %v97_v46, %v97_v46  ;;  %v4635_v50 = vld [vmem:[#allocation7 + $0x184] ss:$16 sps:$4 sm:$0xff]   ;;  %v4639_v52 = vld [vmem:[#allocation7 + $0x180] ss:$16 sps:$4 sm:$0xff]   ;;  %v4640_v53 = vld [vmem:[#allocation7 + $0x188] ss:$16 sps:$4 sm:$0xff]   ;;  %v3984_v4 = vcombine.low %v97_v46, %v97_v46 }
  0x6a   :  { %1304 = vmatpush1.bf16.msra.mxu0 %v4591_v18  ;;  %1427 = vmatpush1.bf16.msra.mxu1 %v4592_v19  ;;  %v4641_v54 = vld [vmem:[#allocation7 + $0x1a4] ss:$16 sps:$4 sm:$0xff]   ;;  %v4643_v55 = vld [vmem:[#allocation7 + $0x1ac] ss:$16 sps:$4 sm:$0xff]   ;;  %v4645_v56 = vld [vmem:[#allocation7 + $0x1a0] ss:$16 sps:$4 sm:$0xff]  }
  0x6b   :  { %1305 = vmatprep.subr.bf16.mxu0 %v4593_v20  ;;  %1428 = vmatprep.subr.bf16.mxu1 %v4595_v21  ;;  %v4646_v57 = vld [vmem:[#allocation7 + $0x1a8] ss:$16 sps:$4 sm:$0xff]   ;;  %v4647_v58 = vld [vmem:[#allocation7 + $0x1c4] ss:$16 sps:$4 sm:$0xff]   ;;  %v4649_v59 = vld [vmem:[#allocation7 + $0x1cc] ss:$16 sps:$4 sm:$0xff]  }
  0x6c   :  { %1327 = vmatprep.mubr.bf16.mxu0 %v3985_v48  ;;  %1450 = vmatprep.mubr.bf16.mxu1 %v3985_v48  ;;  %v4651_v60 = vld [vmem:[#allocation7 + $0x1c0] ss:$16 sps:$4 sm:$0xff]   ;;  %v4652_v61 = vld [vmem:[#allocation7 + $0x1c8] ss:$16 sps:$4 sm:$0xff]   ;;  %v4653_v62 = vld [vmem:[#allocation7 + $0x1e4] ss:$16 sps:$4 sm:$0xff]  }
  0x6d   :  { %v4655_v63 = vld [vmem:[#allocation7 + $0x1ec] ss:$16 sps:$4 sm:$0xff]   ;;  %v4657_v0 = vld [vmem:[#allocation7 + $0x1e0] ss:$16 sps:$4 sm:$0xff]   ;;  %v4658_v1 = vld [vmem:[#allocation7 + $0x1e8] ss:$16 sps:$4 sm:$0xff]  }
  0x6e   :  { %1306 = vmatpush1.bf16.msra.mxu0 %v4597_v22  ;;  %1429 = vmatpush1.bf16.msra.mxu1 %v4598_v23  ;;  %v4663_v2 = vld [vmem:[#allocation7 + $0x204] ss:$16 sps:$4 sm:$0xff]   ;;  %v4666_v3 = vld [vmem:[#allocation7 + $0x20c] ss:$16 sps:$4 sm:$0xff]   ;;  %v4661_v5 = vld [vmem:[#allocation7 + $0x200] ss:$16 sps:$4 sm:$0xff]  }
  0x6f   :  { %1307 = vmatprep.subr.bf16.mxu0 %v4599_v24  ;;  %1430 = vmatprep.subr.bf16.mxu1 %v4601_v25  ;;  %v4664_v6 = vld [vmem:[#allocation7 + $0x208] ss:$16 sps:$4 sm:$0xff]   ;;  %v4669_v7 = vld [vmem:[#allocation7 + $0x224] ss:$16 sps:$4 sm:$0xff]   ;;  %v4672_v8 = vld [vmem:[#allocation7 + $0x22c] ss:$16 sps:$4 sm:$0xff]  }
  0x70   :  { %v4667_v9 = vld [vmem:[#allocation7 + $0x220] ss:$16 sps:$4 sm:$0xff]   ;;  %v4670_v10 = vld [vmem:[#allocation7 + $0x228] ss:$16 sps:$4 sm:$0xff]   ;;  %v4675_v11 = vld [vmem:[#allocation7 + $0x244] ss:$16 sps:$4 sm:$0xff]  }
  0x71   :  { %v4678_v12 = vld [vmem:[#allocation7 + $0x24c] ss:$16 sps:$4 sm:$0xff]   ;;  %v4673_v13 = vld [vmem:[#allocation7 + $0x240] ss:$16 sps:$4 sm:$0xff]   ;;  %v4676_v14 = vld [vmem:[#allocation7 + $0x248] ss:$16 sps:$4 sm:$0xff]  }
  0x72   :  { %1308 = vmatpush1.bf16.msra.mxu0 %v4603_v26  ;;  %1431 = vmatpush1.bf16.msra.mxu1 %v4604_v27  ;;  %v4681_v15 = vld [vmem:[#allocation7 + $0x264] ss:$16 sps:$4 sm:$0xff]   ;;  %v4684_v16 = vld [vmem:[#allocation7 + $0x26c] ss:$16 sps:$4 sm:$0xff]   ;;  %v4679_v17 = vld [vmem:[#allocation7 + $0x260] ss:$16 sps:$4 sm:$0xff]  }
  0x73   :  { %1309 = vmatprep.subr.bf16.mxu0 %v4605_v28  ;;  %1432 = vmatprep.subr.bf16.mxu1 %v4607_v29  ;;  %v4682_v18 = vld [vmem:[#allocation7 + $0x268] ss:$16 sps:$4 sm:$0xff]   ;;  %v4687_v19 = vld [vmem:[#allocation7 + $0x284] ss:$16 sps:$4 sm:$0xff]   ;;  %v4690_v20 = vld [vmem:[#allocation7 + $0x28c] ss:$16 sps:$4 sm:$0xff]  }
  0x74   :  { %v4685_v21 = vld [vmem:[#allocation7 + $0x280] ss:$16 sps:$4 sm:$0xff]   ;;  %v4688_v22 = vld [vmem:[#allocation7 + $0x288] ss:$16 sps:$4 sm:$0xff]   ;;  %v4693_v23 = vld [vmem:[#allocation7 + $0x2a4] ss:$16 sps:$4 sm:$0xff]  }
  0x75   :  { %v4696_v24 = vld [vmem:[#allocation7 + $0x2ac] ss:$16 sps:$4 sm:$0xff]   ;;  %v4691_v25 = vld [vmem:[#allocation7 + $0x2a0] ss:$16 sps:$4 sm:$0xff]   ;;  %v4694_v26 = vld [vmem:[#allocation7 + $0x2a8] ss:$16 sps:$4 sm:$0xff]  }
  0x76   :  { %1310 = vmatpush1.bf16.msra.mxu0 %v4609_v30  ;;  %1433 = vmatpush1.bf16.msra.mxu1 %v4610_v31  ;;  %v4699_v27 = vld [vmem:[#allocation7 + $0x2c4] ss:$16 sps:$4 sm:$0xff]   ;;  %v4702_v28 = vld [vmem:[#allocation7 + $0x2cc] ss:$16 sps:$4 sm:$0xff]   ;;  %v4697_v31 = vld [vmem:[#allocation7 + $0x2c0] ss:$16 sps:$4 sm:$0xff]  }
  0x77   :  { %1311 = vmatprep.subr.bf16.mxu0 %v4611_v32  ;;  %1434 = vmatprep.subr.bf16.mxu1 %v4613_v33  ;;  %v5585_v29 = vld [vmem:[#allocation3 + $0x8] sm:$0xff]  ;;  %v4705_v33 = vld [vmem:[#allocation7 + $0x2e4] ss:$16 sps:$4 sm:$0xff]  }
  0x78   :  { %v3987_v30 = vcombine.high %v5585_v29, %v5585_v29  ;;  %v4700_v32 = vld [vmem:[#allocation7 + $0x2c8] ss:$16 sps:$4 sm:$0xff]   ;;  %v4726_v46 = vld [vmem:[#allocation7 + $0x34c] ss:$16 sps:$4 sm:$0xff]  }
  0x79   :  { %v4724_v48 = vld [vmem:[#allocation7 + $0x348] ss:$16 sps:$4 sm:$0xff]  }
  0x7a   :  { %1312 = vmatpush1.bf16.msra.mxu0 %v4615_v34  ;;  %1435 = vmatpush1.bf16.msra.mxu1 %v4616_v35  ;;  %v4708_v34 = vld [vmem:[#allocation7 + $0x2ec] ss:$16 sps:$4 sm:$0xff]   ;;  %v4703_v35 = vld [vmem:[#allocation7 + $0x2e0] ss:$16 sps:$4 sm:$0xff]  }
  0x7b   :  { %1313 = vmatprep.subr.bf16.mxu0 %v4617_v36  ;;  %1436 = vmatprep.subr.bf16.mxu1 %v4619_v37  ;;  %v4706_v36 = vld [vmem:[#allocation7 + $0x2e8] ss:$16 sps:$4 sm:$0xff]   ;;  %v4711_v37 = vld [vmem:[#allocation7 + $0x304] ss:$16 sps:$4 sm:$0xff]  }
  0x7e   :  { %1314 = vmatpush1.bf16.msra.mxu0 %v4621_v38  ;;  %1437 = vmatpush1.bf16.msra.mxu1 %v4622_v39  ;;  %v4714_v38 = vld [vmem:[#allocation7 + $0x30c] ss:$16 sps:$4 sm:$0xff]   ;;  %v4709_v39 = vld [vmem:[#allocation7 + $0x300] ss:$16 sps:$4 sm:$0xff]  }
  0x7f   :  { %1315 = vmatprep.subr.bf16.mxu0 %v4623_v40  ;;  %1438 = vmatprep.subr.bf16.mxu1 %v4625_v41  ;;  %v4712_v40 = vld [vmem:[#allocation7 + $0x308] ss:$16 sps:$4 sm:$0xff]   ;;  %v4717_v41 = vld [vmem:[#allocation7 + $0x324] ss:$16 sps:$4 sm:$0xff]  }
  0x82   :  { %1316 = vmatpush1.bf16.msra.mxu0 %v4627_v42  ;;  %1439 = vmatpush1.bf16.msra.mxu1 %v4628_v43  ;;  %v4720_v42 = vld [vmem:[#allocation7 + $0x32c] ss:$16 sps:$4 sm:$0xff]   ;;  %v4715_v43 = vld [vmem:[#allocation7 + $0x320] ss:$16 sps:$4 sm:$0xff]  }
  0x83   :  { %1317 = vmatprep.subr.bf16.mxu0 %v4629_v44  ;;  %1440 = vmatprep.subr.bf16.mxu1 %v4631_v45  ;;  %v4718_v44 = vld [vmem:[#allocation7 + $0x328] ss:$16 sps:$4 sm:$0xff]   ;;  %v4723_v45 = vld [vmem:[#allocation7 + $0x344] ss:$16 sps:$4 sm:$0xff]  }
  0x86   :  { %1318 = vmatpush1.bf16.msra.mxu0 %v4633_v47  ;;  %1441 = vmatpush1.bf16.msra.mxu1 %v4634_v49  ;;  %v4721_v47 = vld [vmem:[#allocation7 + $0x340] ss:$16 sps:$4 sm:$0xff]   ;;  %v4729_v49 = vld [vmem:[#allocation7 + $0x364] ss:$16 sps:$4 sm:$0xff]  }
  0x87   :  { %1319 = vmatprep.subr.bf16.mxu0 %v4635_v50  ;;  %1442 = vmatprep.subr.bf16.mxu1 %v4637_v51  ;;  %v4732_v50 = vld [vmem:[#allocation7 + $0x36c] ss:$16 sps:$4 sm:$0xff]   ;;  %v4727_v51 = vld [vmem:[#allocation7 + $0x360] ss:$16 sps:$4 sm:$0xff]  }
  0x8a   :  { %1320 = vmatpush1.bf16.msra.mxu0 %v4639_v52  ;;  %1443 = vmatpush1.bf16.msra.mxu1 %v4640_v53  ;;  %v4730_v52 = vld [vmem:[#allocation7 + $0x368] ss:$16 sps:$4 sm:$0xff]   ;;  %v4735_v53 = vld [vmem:[#allocation7 + $0x384] ss:$16 sps:$4 sm:$0xff]  }
  0x8b   :  { %1321 = vmatprep.subr.bf16.mxu0 %v4641_v54  ;;  %1444 = vmatprep.subr.bf16.mxu1 %v4643_v55  ;;  %v4738_v54 = vld [vmem:[#allocation7 + $0x38c] ss:$16 sps:$4 sm:$0xff]   ;;  %v4733_v55 = vld [vmem:[#allocation7 + $0x380] ss:$16 sps:$4 sm:$0xff]  }
  0x8e   :  { %1322 = vmatpush1.bf16.msra.mxu0 %v4645_v56  ;;  %1445 = vmatpush1.bf16.msra.mxu1 %v4646_v57  ;;  %v4736_v56 = vld [vmem:[#allocation7 + $0x388] ss:$16 sps:$4 sm:$0xff]   ;;  %v4741_v57 = vld [vmem:[#allocation7 + $0x3a4] ss:$16 sps:$4 sm:$0xff]  }
  0x8f   :  { %1323 = vmatprep.subr.bf16.mxu0 %v4647_v58  ;;  %1446 = vmatprep.subr.bf16.mxu1 %v4649_v59  ;;  %v4744_v58 = vld [vmem:[#allocation7 + $0x3ac] ss:$16 sps:$4 sm:$0xff]   ;;  %v4739_v59 = vld [vmem:[#allocation7 + $0x3a0] ss:$16 sps:$4 sm:$0xff]  }
  0x92   :  { %1324 = vmatpush1.bf16.msra.mxu0 %v4651_v60  ;;  %1447 = vmatpush1.bf16.msra.mxu1 %v4652_v61  ;;  %v4742_v60 = vld [vmem:[#allocation7 + $0x3a8] ss:$16 sps:$4 sm:$0xff]   ;;  %v4747_v61 = vld [vmem:[#allocation7 + $0x3c4] ss:$16 sps:$4 sm:$0xff]  }
  0x93   :  { %1325 = vmatprep.subr.bf16.mxu0 %v4653_v62  ;;  %1448 = vmatprep.subr.bf16.mxu1 %v4655_v63  ;;  %v4750_v62 = vld [vmem:[#allocation7 + $0x3cc] ss:$16 sps:$4 sm:$0xff]   ;;  %v4745_v63 = vld [vmem:[#allocation7 + $0x3c0] ss:$16 sps:$4 sm:$0xff]  }
  0x96   :  { %1326 = vmatpush1.bf16.msra.mxu0 %v4657_v0  ;;  %1449 = vmatpush1.bf16.msra.mxu1 %v4658_v1  ;;  %v4748_v0 = vld [vmem:[#allocation7 + $0x3c8] ss:$16 sps:$4 sm:$0xff]   ;;  %v4753_v1 = vld [vmem:[#allocation7 + $0x3e4] ss:$16 sps:$4 sm:$0xff]  }
  0x97   :  { %1336 = vmatprep.subr.bf16.mxu0 %v4663_v2  ;;  %1459 = vmatprep.subr.bf16.mxu1 %v4666_v3  ;;  %v4756_v2 = vld [vmem:[#allocation7 + $0x3ec] ss:$16 sps:$4 sm:$0xff]   ;;  %v4751_v3 = vld [vmem:[#allocation7 + $0x3e0] ss:$16 sps:$4 sm:$0xff]  }
  0x99   :  { %1328 = vmatmul.mubr.bf16.vlgmr.msra.gmra.mrb[0].mxu0 %v3984_v4  ;;  %1451 = vmatmul.mubr.bf16.vlgmr.msra.gmra.mrb[0].mxu1 %v3984_v4  ;;  %v4754_v4 = vld [vmem:[#allocation7 + $0x3e8] ss:$16 sps:$4 sm:$0xff]  }
  0x9a   :  { %1337 = vmatpush1.bf16.msra.mxu0 %v4661_v5  ;;  %1460 = vmatpush1.bf16.msra.mxu1 %v4664_v6  ;;  %v4761_v5 = vld [vmem:[#allocation7 + $0x404] ss:$16 sps:$4 sm:$0xff]   ;;  %v4764_v6 = vld [vmem:[#allocation7 + $0x40c] ss:$16 sps:$4 sm:$0xff]  }
  0x9b   :  { %1338 = vmatprep.subr.bf16.mxu0 %v4669_v7  ;;  %1461 = vmatprep.subr.bf16.mxu1 %v4672_v8  ;;  %v3986_v7 = vcombine.low %v5585_v29, %v5585_v29  ;;  %v4759_v8 = vld [vmem:[#allocation7 + $0x400] ss:$16 sps:$4 sm:$0xff]   ;;  %v4794_v29 = vld [vmem:[#allocation7 + $0x4ac] ss:$16 sps:$4 sm:$0xff]  }
  0x9c   :  { %1368 = vmatprep.mubr.bf16.mxu0 %v3987_v30  ;;  %1491 = vmatprep.mubr.bf16.mxu1 %v3987_v30  ;;  %v4789_v30 = vld [vmem:[#allocation7 + $0x4a0] ss:$16 sps:$4 sm:$0xff]  }
  0x9e   :  { %1339 = vmatpush1.bf16.msra.mxu0 %v4667_v9  ;;  %1462 = vmatpush1.bf16.msra.mxu1 %v4670_v10  ;;  %v4762_v9 = vld [vmem:[#allocation7 + $0x408] ss:$16 sps:$4 sm:$0xff]   ;;  %v4767_v10 = vld [vmem:[#allocation7 + $0x424] ss:$16 sps:$4 sm:$0xff]  }
  0x9f   :  { %1340 = vmatprep.subr.bf16.mxu0 %v4675_v11  ;;  %1463 = vmatprep.subr.bf16.mxu1 %v4678_v12  ;;  %v5591_v11 = vld [vmem:[#allocation3 + $0x10] sm:$0xff]  ;;  %v4770_v12 = vld [vmem:[#allocation7 + $0x42c] ss:$16 sps:$4 sm:$0xff]  }
  0xa2   :  { %1341 = vmatpush1.bf16.msra.mxu0 %v4673_v13  ;;  %1464 = vmatpush1.bf16.msra.mxu1 %v4676_v14  ;;  %v3989_v13 = vcombine.high %v5591_v11, %v5591_v11  ;;  %v4765_v14 = vld [vmem:[#allocation7 + $0x420] ss:$16 sps:$4 sm:$0xff]  }
  0xa3   :  { %1342 = vmatprep.subr.bf16.mxu0 %v4681_v15  ;;  %1465 = vmatprep.subr.bf16.mxu1 %v4684_v16  ;;  %v4768_v15 = vld [vmem:[#allocation7 + $0x428] ss:$16 sps:$4 sm:$0xff]   ;;  %v4773_v16 = vld [vmem:[#allocation7 + $0x444] ss:$16 sps:$4 sm:$0xff]  }
  0xa6   :  { %1343 = vmatpush1.bf16.msra.mxu0 %v4679_v17  ;;  %1466 = vmatpush1.bf16.msra.mxu1 %v4682_v18  ;;  %v4776_v17 = vld [vmem:[#allocation7 + $0x44c] ss:$16 sps:$4 sm:$0xff]   ;;  %v4771_v18 = vld [vmem:[#allocation7 + $0x440] ss:$16 sps:$4 sm:$0xff]  }
  0xa7   :  { %1344 = vmatprep.subr.bf16.mxu0 %v4687_v19  ;;  %1467 = vmatprep.subr.bf16.mxu1 %v4690_v20  ;;  %v4774_v19 = vld [vmem:[#allocation7 + $0x448] ss:$16 sps:$4 sm:$0xff]   ;;  %v4779_v20 = vld [vmem:[#allocation7 + $0x464] ss:$16 sps:$4 sm:$0xff]  }
  0xaa   :  { %1345 = vmatpush1.bf16.msra.mxu0 %v4685_v21  ;;  %1468 = vmatpush1.bf16.msra.mxu1 %v4688_v22  ;;  %v4782_v21 = vld [vmem:[#allocation7 + $0x46c] ss:$16 sps:$4 sm:$0xff]   ;;  %v4777_v22 = vld [vmem:[#allocation7 + $0x460] ss:$16 sps:$4 sm:$0xff]  }
  0xab   :  { %1346 = vmatprep.subr.bf16.mxu0 %v4693_v23  ;;  %1469 = vmatprep.subr.bf16.mxu1 %v4696_v24  ;;  %v4780_v23 = vld [vmem:[#allocation7 + $0x468] ss:$16 sps:$4 sm:$0xff]   ;;  %v4785_v24 = vld [vmem:[#allocation7 + $0x484] ss:$16 sps:$4 sm:$0xff]  }
  0xae   :  { %1347 = vmatpush1.bf16.msra.mxu0 %v4691_v25  ;;  %1470 = vmatpush1.bf16.msra.mxu1 %v4694_v26  ;;  %v4788_v25 = vld [vmem:[#allocation7 + $0x48c] ss:$16 sps:$4 sm:$0xff]   ;;  %v4783_v26 = vld [vmem:[#allocation7 + $0x480] ss:$16 sps:$4 sm:$0xff]  }
  0xaf   :  { %1348 = vmatprep.subr.bf16.mxu0 %v4699_v27  ;;  %1471 = vmatprep.subr.bf16.mxu1 %v4702_v28  ;;  %v4786_v27 = vld [vmem:[#allocation7 + $0x488] ss:$16 sps:$4 sm:$0xff]   ;;  %v4791_v28 = vld [vmem:[#allocation7 + $0x4a4] ss:$16 sps:$4 sm:$0xff]  }
  0xb2   :  { %1349 = vmatpush1.bf16.msra.mxu0 %v4697_v31  ;;  %1472 = vmatpush1.bf16.msra.mxu1 %v4700_v32  ;;  %v4792_v31 = vld [vmem:[#allocation7 + $0x4a8] ss:$16 sps:$4 sm:$0xff]   ;;  %v4797_v32 = vld [vmem:[#allocation7 + $0x4c4] ss:$16 sps:$4 sm:$0xff]  }
  0xb3   :  { %1350 = vmatprep.subr.bf16.mxu0 %v4705_v33  ;;  %1473 = vmatprep.subr.bf16.mxu1 %v4708_v34  ;;  %v4800_v33 = vld [vmem:[#allocation7 + $0x4cc] ss:$16 sps:$4 sm:$0xff]   ;;  %v4795_v34 = vld [vmem:[#allocation7 + $0x4c0] ss:$16 sps:$4 sm:$0xff]  }
  0xb6   :  { %1351 = vmatpush1.bf16.msra.mxu0 %v4703_v35  ;;  %1474 = vmatpush1.bf16.msra.mxu1 %v4706_v36  ;;  %v4798_v35 = vld [vmem:[#allocation7 + $0x4c8] ss:$16 sps:$4 sm:$0xff]   ;;  %v4803_v36 = vld [vmem:[#allocation7 + $0x4e4] ss:$16 sps:$4 sm:$0xff]  }
  0xb7   :  { %1352 = vmatprep.subr.bf16.mxu0 %v4711_v37  ;;  %1475 = vmatprep.subr.bf16.mxu1 %v4714_v38  ;;  %v4806_v37 = vld [vmem:[#allocation7 + $0x4ec] ss:$16 sps:$4 sm:$0xff]   ;;  %v4801_v38 = vld [vmem:[#allocation7 + $0x4e0] ss:$16 sps:$4 sm:$0xff]  }
  0xba   :  { %1353 = vmatpush1.bf16.msra.mxu0 %v4709_v39  ;;  %1476 = vmatpush1.bf16.msra.mxu1 %v4712_v40  ;;  %v4804_v39 = vld [vmem:[#allocation7 + $0x4e8] ss:$16 sps:$4 sm:$0xff]   ;;  %v4809_v40 = vld [vmem:[#allocation7 + $0x504] ss:$16 sps:$4 sm:$0xff]  }
  0xbb   :  { %1354 = vmatprep.subr.bf16.mxu0 %v4717_v41  ;;  %1477 = vmatprep.subr.bf16.mxu1 %v4720_v42  ;;  %v4812_v41 = vld [vmem:[#allocation7 + $0x50c] ss:$16 sps:$4 sm:$0xff]   ;;  %v4807_v42 = vld [vmem:[#allocation7 + $0x500] ss:$16 sps:$4 sm:$0xff]  }
  0xbe   :  { %1355 = vmatpush1.bf16.msra.mxu0 %v4715_v43  ;;  %1478 = vmatpush1.bf16.msra.mxu1 %v4718_v44  ;;  %v4810_v43 = vld [vmem:[#allocation7 + $0x508] ss:$16 sps:$4 sm:$0xff]   ;;  %v4815_v44 = vld [vmem:[#allocation7 + $0x524] ss:$16 sps:$4 sm:$0xff]  }
  0xbf   :  { %1356 = vmatprep.subr.bf16.mxu0 %v4723_v45  ;;  %1479 = vmatprep.subr.bf16.mxu1 %v4726_v46  ;;  %v4818_v45 = vld [vmem:[#allocation7 + $0x52c] ss:$16 sps:$4 sm:$0xff]   ;;  %v4813_v46 = vld [vmem:[#allocation7 + $0x520] ss:$16 sps:$4 sm:$0xff]  }
  0xc2   :  { %1357 = vmatpush1.bf16.msra.mxu0 %v4721_v47  ;;  %1480 = vmatpush1.bf16.msra.mxu1 %v4724_v48  ;;  %v4816_v47 = vld [vmem:[#allocation7 + $0x528] ss:$16 sps:$4 sm:$0xff]   ;;  %v4821_v48 = vld [vmem:[#allocation7 + $0x544] ss:$16 sps:$4 sm:$0xff]  }
  0xc3   :  { %1358 = vmatprep.subr.bf16.mxu0 %v4729_v49  ;;  %1481 = vmatprep.subr.bf16.mxu1 %v4732_v50  ;;  %v4824_v49 = vld [vmem:[#allocation7 + $0x54c] ss:$16 sps:$4 sm:$0xff]   ;;  %v4819_v50 = vld [vmem:[#allocation7 + $0x540] ss:$16 sps:$4 sm:$0xff]  }
  0xc6   :  { %1359 = vmatpush1.bf16.msra.mxu0 %v4727_v51  ;;  %1482 = vmatpush1.bf16.msra.mxu1 %v4730_v52  ;;  %v4822_v51 = vld [vmem:[#allocation7 + $0x548] ss:$16 sps:$4 sm:$0xff]   ;;  %v4827_v52 = vld [vmem:[#allocation7 + $0x564] ss:$16 sps:$4 sm:$0xff]  }
  0xc7   :  { %1360 = vmatprep.subr.bf16.mxu0 %v4735_v53  ;;  %1483 = vmatprep.subr.bf16.mxu1 %v4738_v54  ;;  %v4830_v53 = vld [vmem:[#allocation7 + $0x56c] ss:$16 sps:$4 sm:$0xff]   ;;  %v4825_v54 = vld [vmem:[#allocation7 + $0x560] ss:$16 sps:$4 sm:$0xff]  }
  0xca   :  { %1361 = vmatpush1.bf16.msra.mxu0 %v4733_v55  ;;  %1484 = vmatpush1.bf16.msra.mxu1 %v4736_v56  ;;  %v4828_v55 = vld [vmem:[#allocation7 + $0x568] ss:$16 sps:$4 sm:$0xff]   ;;  %v4833_v56 = vld [vmem:[#allocation7 + $0x584] ss:$16 sps:$4 sm:$0xff]  }
  0xcb   :  { %1362 = vmatprep.subr.bf16.mxu0 %v4741_v57  ;;  %1485 = vmatprep.subr.bf16.mxu1 %v4744_v58  ;;  %v4836_v57 = vld [vmem:[#allocation7 + $0x58c] ss:$16 sps:$4 sm:$0xff]   ;;  %v4831_v58 = vld [vmem:[#allocation7 + $0x580] ss:$16 sps:$4 sm:$0xff]  }
  0xce   :  { %1363 = vmatpush1.bf16.msra.mxu0 %v4739_v59  ;;  %1486 = vmatpush1.bf16.msra.mxu1 %v4742_v60  ;;  %v4834_v59 = vld [vmem:[#allocation7 + $0x588] ss:$16 sps:$4 sm:$0xff]   ;;  %v4839_v60 = vld [vmem:[#allocation7 + $0x5a4] ss:$16 sps:$4 sm:$0xff]  }
  0xcf   :  { %1364 = vmatprep.subr.bf16.mxu0 %v4747_v61  ;;  %1487 = vmatprep.subr.bf16.mxu1 %v4750_v62  ;;  %v4842_v61 = vld [vmem:[#allocation7 + $0x5ac] ss:$16 sps:$4 sm:$0xff]   ;;  %v4837_v62 = vld [vmem:[#allocation7 + $0x5a0] ss:$16 sps:$4 sm:$0xff]  }
  0xd2   :  { %1365 = vmatpush1.bf16.msra.mxu0 %v4745_v63  ;;  %1488 = vmatpush1.bf16.msra.mxu1 %v4748_v0  ;;  %v4840_v63 = vld [vmem:[#allocation7 + $0x5a8] ss:$16 sps:$4 sm:$0xff]   ;;  %v4845_v0 = vld [vmem:[#allocation7 + $0x5c4] ss:$16 sps:$4 sm:$0xff]  }
  0xd3   :  { %1366 = vmatprep.subr.bf16.mxu0 %v4753_v1  ;;  %1489 = vmatprep.subr.bf16.mxu1 %v4756_v2  ;;  %v4848_v1 = vld [vmem:[#allocation7 + $0x5cc] ss:$16 sps:$4 sm:$0xff]   ;;  %v4843_v2 = vld [vmem:[#allocation7 + $0x5c0] ss:$16 sps:$4 sm:$0xff]  }
  0xd6   :  { %1367 = vmatpush1.bf16.msra.mxu0 %v4751_v3  ;;  %1490 = vmatpush1.bf16.msra.mxu1 %v4754_v4  ;;  %v4846_v3 = vld [vmem:[#allocation7 + $0x5c8] ss:$16 sps:$4 sm:$0xff]   ;;  %v4851_v4 = vld [vmem:[#allocation7 + $0x5e4] ss:$16 sps:$4 sm:$0xff]  }
  0xd7   :  { %1377 = vmatprep.subr.bf16.mxu0 %v4761_v5  ;;  %1500 = vmatprep.subr.bf16.mxu1 %v4764_v6  ;;  %v4854_v5 = vld [vmem:[#allocation7 + $0x5ec] ss:$16 sps:$4 sm:$0xff]   ;;  %v4849_v6 = vld [vmem:[#allocation7 + $0x5e0] ss:$16 sps:$4 sm:$0xff]  }
  0xd9   :  { %1369 = vmatmul.mubr.bf16.vlgmr.msra.gmra.mrb[0].mxu0 %v3986_v7  ;;  %1492 = vmatmul.mubr.bf16.vlgmr.msra.gmra.mrb[0].mxu1 %v3986_v7  ;;  %v4852_v7 = vld [vmem:[#allocation7 + $0x5e8] ss:$16 sps:$4 sm:$0xff]  }
  0xda   :  { %1378 = vmatpush1.bf16.msra.mxu0 %v4759_v8  ;;  %1501 = vmatpush1.bf16.msra.mxu1 %v4762_v9  ;;  %v4859_v8 = vld [vmem:[#allocation8 + $0x4] ss:$16 sps:$4 sm:$0xff]   ;;  %v4862_v9 = vld [vmem:[#allocation8 + $0xc] ss:$16 sps:$4 sm:$0xff]  }
  0xdb   :  { %1379 = vmatprep.subr.bf16.mxu0 %v4767_v10  ;;  %1502 = vmatprep.subr.bf16.mxu1 %v4770_v12  ;;  %v4857_v10 = vld [vmem:[#allocation8] ss:$16 sps:$4 sm:$0xff]   ;;  %v3988_v12 = vcombine.low %v5591_v11, %v5591_v11  ;;  %v4874_v11 = vld [vmem:[#allocation8 + $0x4c] ss:$16 sps:$4 sm:$0xff]  }
  0xdc   :  { %1409 = vmatprep.mubr.bf16.mxu0 %v3989_v13  ;;  %1532 = vmatprep.mubr.bf16.mxu1 %v3989_v13  ;;  %v4860_v13 = vld [vmem:[#allocation8 + $0x8] ss:$16 sps:$4 sm:$0xff]  }
  0xde   :  { %1380 = vmatpush1.bf16.msra.mxu0 %v4765_v14  ;;  %1503 = vmatpush1.bf16.msra.mxu1 %v4768_v15  ;;  %v5597_v14 = vld [vmem:[#allocation5] sm:$0xff]  ;;  %v4865_v15 = vld [vmem:[#allocation8 + $0x24] ss:$16 sps:$4 sm:$0xff]  }
  0xdf   :  { %1381 = vmatprep.subr.bf16.mxu0 %v4773_v16  ;;  %1504 = vmatprep.subr.bf16.mxu1 %v4776_v17  ;;  %v4868_v16 = vld [vmem:[#allocation8 + $0x2c] ss:$16 sps:$4 sm:$0xff]   ;;  %v4183_v17 = vcombine.high %v5597_v14, %v5597_v14 }
  0xe2   :  { %1382 = vmatpush1.bf16.msra.mxu0 %v4771_v18  ;;  %1505 = vmatpush1.bf16.msra.mxu1 %v4774_v19  ;;  %v4863_v18 = vld [vmem:[#allocation8 + $0x20] ss:$16 sps:$4 sm:$0xff]   ;;  %v4866_v19 = vld [vmem:[#allocation8 + $0x28] ss:$16 sps:$4 sm:$0xff]  }
  0xe3   :  { %1383 = vmatprep.subr.bf16.mxu0 %v4779_v20  ;;  %1506 = vmatprep.subr.bf16.mxu1 %v4782_v21  ;;  %v4871_v20 = vld [vmem:[#allocation8 + $0x44] ss:$16 sps:$4 sm:$0xff]   ;;  %v4869_v21 = vld [vmem:[#allocation8 + $0x40] ss:$16 sps:$4 sm:$0xff]  }
  0xe6   :  { %1384 = vmatpush1.bf16.msra.mxu0 %v4777_v22  ;;  %1507 = vmatpush1.bf16.msra.mxu1 %v4780_v23  ;;  %v4872_v22 = vld [vmem:[#allocation8 + $0x48] ss:$16 sps:$4 sm:$0xff]   ;;  %v4877_v23 = vld [vmem:[#allocation8 + $0x64] ss:$16 sps:$4 sm:$0xff]  }
  0xe7   :  { %1385 = vmatprep.subr.bf16.mxu0 %v4785_v24  ;;  %1508 = vmatprep.subr.bf16.mxu1 %v4788_v25  ;;  %v4880_v24 = vld [vmem:[#allocation8 + $0x6c] ss:$16 sps:$4 sm:$0xff]   ;;  %v4875_v25 = vld [vmem:[#allocation8 + $0x60] ss:$16 sps:$4 sm:$0xff]  }
  0xea   :  { %1386 = vmatpush1.bf16.msra.mxu0 %v4783_v26  ;;  %1509 = vmatpush1.bf16.msra.mxu1 %v4786_v27  ;;  %v4878_v26 = vld [vmem:[#allocation8 + $0x68] ss:$16 sps:$4 sm:$0xff]   ;;  %v4883_v27 = vld [vmem:[#allocation8 + $0x84] ss:$16 sps:$4 sm:$0xff]  }
  0xeb   :  { %1387 = vmatprep.subr.bf16.mxu0 %v4791_v28  ;;  %1510 = vmatprep.subr.bf16.mxu1 %v4794_v29  ;;  %v4886_v28 = vld [vmem:[#allocation8 + $0x8c] ss:$16 sps:$4 sm:$0xff]   ;;  %v4881_v29 = vld [vmem:[#allocation8 + $0x80] ss:$16 sps:$4 sm:$0xff]  }
  0xee   :  { %1388 = vmatpush1.bf16.msra.mxu0 %v4789_v30  ;;  %1511 = vmatpush1.bf16.msra.mxu1 %v4792_v31  ;;  %v4884_v30 = vld [vmem:[#allocation8 + $0x88] ss:$16 sps:$4 sm:$0xff]   ;;  %v4889_v31 = vld [vmem:[#allocation8 + $0xa4] ss:$16 sps:$4 sm:$0xff]  }
  0xef   :  { %1389 = vmatprep.subr.bf16.mxu0 %v4797_v32  ;;  %1512 = vmatprep.subr.bf16.mxu1 %v4800_v33  ;;  %v4892_v32 = vld [vmem:[#allocation8 + $0xac] ss:$16 sps:$4 sm:$0xff]   ;;  %v4887_v33 = vld [vmem:[#allocation8 + $0xa0] ss:$16 sps:$4 sm:$0xff]  }
  0xf2   :  { %1390 = vmatpush1.bf16.msra.mxu0 %v4795_v34  ;;  %1513 = vmatpush1.bf16.msra.mxu1 %v4798_v35  ;;  %v4890_v34 = vld [vmem:[#allocation8 + $0xa8] ss:$16 sps:$4 sm:$0xff]   ;;  %v4895_v35 = vld [vmem:[#allocation8 + $0xc4] ss:$16 sps:$4 sm:$0xff]  }
  0xf3   :  { %1391 = vmatprep.subr.bf16.mxu0 %v4803_v36  ;;  %1514 = vmatprep.subr.bf16.mxu1 %v4806_v37  ;;  %v4898_v36 = vld [vmem:[#allocation8 + $0xcc] ss:$16 sps:$4 sm:$0xff]   ;;  %v4893_v37 = vld [vmem:[#allocation8 + $0xc0] ss:$16 sps:$4 sm:$0xff]  }
  0xf6   :  { %1392 = vmatpush1.bf16.msra.mxu0 %v4801_v38  ;;  %1515 = vmatpush1.bf16.msra.mxu1 %v4804_v39  ;;  %v4896_v38 = vld [vmem:[#allocation8 + $0xc8] ss:$16 sps:$4 sm:$0xff]   ;;  %v4901_v39 = vld [vmem:[#allocation8 + $0xe4] ss:$16 sps:$4 sm:$0xff]  }
  0xf7   :  { %1393 = vmatprep.subr.bf16.mxu0 %v4809_v40  ;;  %1516 = vmatprep.subr.bf16.mxu1 %v4812_v41  ;;  %v4904_v40 = vld [vmem:[#allocation8 + $0xec] ss:$16 sps:$4 sm:$0xff]   ;;  %v4899_v41 = vld [vmem:[#allocation8 + $0xe0] ss:$16 sps:$4 sm:$0xff]  }
  0xfa   :  { %1394 = vmatpush1.bf16.msra.mxu0 %v4807_v42  ;;  %1517 = vmatpush1.bf16.msra.mxu1 %v4810_v43  ;;  %v4902_v42 = vld [vmem:[#allocation8 + $0xe8] ss:$16 sps:$4 sm:$0xff]   ;;  %v4907_v43 = vld [vmem:[#allocation8 + $0x104] ss:$16 sps:$4 sm:$0xff]  }
  0xfb   :  { %1395 = vmatprep.subr.bf16.mxu0 %v4815_v44  ;;  %1518 = vmatprep.subr.bf16.mxu1 %v4818_v45  ;;  %v4910_v44 = vld [vmem:[#allocation8 + $0x10c] ss:$16 sps:$4 sm:$0xff]   ;;  %v4905_v45 = vld [vmem:[#allocation8 + $0x100] ss:$16 sps:$4 sm:$0xff]  }
  0xfe   :  { %1396 = vmatpush1.bf16.msra.mxu0 %v4813_v46  ;;  %1519 = vmatpush1.bf16.msra.mxu1 %v4816_v47  ;;  %v4908_v46 = vld [vmem:[#allocation8 + $0x108] ss:$16 sps:$4 sm:$0xff]   ;;  %v4913_v47 = vld [vmem:[#allocation8 + $0x124] ss:$16 sps:$4 sm:$0xff]  }
  0xff   :  { %1397 = vmatprep.subr.bf16.mxu0 %v4821_v48  ;;  %1520 = vmatprep.subr.bf16.mxu1 %v4824_v49  ;;  %v4916_v48 = vld [vmem:[#allocation8 + $0x12c] ss:$16 sps:$4 sm:$0xff]   ;;  %v4911_v49 = vld [vmem:[#allocation8 + $0x120] ss:$16 sps:$4 sm:$0xff]  }
 0x102   :  { %1398 = vmatpush1.bf16.msra.mxu0 %v4819_v50  ;;  %1521 = vmatpush1.bf16.msra.mxu1 %v4822_v51  ;;  %v4914_v50 = vld [vmem:[#allocation8 + $0x128] ss:$16 sps:$4 sm:$0xff]   ;;  %v4919_v51 = vld [vmem:[#allocation8 + $0x144] ss:$16 sps:$4 sm:$0xff]  }
 0x103   :  { %1399 = vmatprep.subr.bf16.mxu0 %v4827_v52  ;;  %1522 = vmatprep.subr.bf16.mxu1 %v4830_v53  ;;  %v4922_v52 = vld [vmem:[#allocation8 + $0x14c] ss:$16 sps:$4 sm:$0xff]   ;;  %v4917_v53 = vld [vmem:[#allocation8 + $0x140] ss:$16 sps:$4 sm:$0xff]  }
 0x106   :  { %1400 = vmatpush1.bf16.msra.mxu0 %v4825_v54  ;;  %1523 = vmatpush1.bf16.msra.mxu1 %v4828_v55  ;;  %v4920_v54 = vld [vmem:[#allocation8 + $0x148] ss:$16 sps:$4 sm:$0xff]   ;;  %v4925_v55 = vld [vmem:[#allocation8 + $0x164] ss:$16 sps:$4 sm:$0xff]  }
 0x107   :  { %1401 = vmatprep.subr.bf16.mxu0 %v4833_v56  ;;  %1524 = vmatprep.subr.bf16.mxu1 %v4836_v57  ;;  %v4928_v56 = vld [vmem:[#allocation8 + $0x16c] ss:$16 sps:$4 sm:$0xff]   ;;  %v4923_v57 = vld [vmem:[#allocation8 + $0x160] ss:$16 sps:$4 sm:$0xff]  }
 0x10a   :  { %1402 = vmatpush1.bf16.msra.mxu0 %v4831_v58  ;;  %1525 = vmatpush1.bf16.msra.mxu1 %v4834_v59  ;;  %v4926_v58 = vld [vmem:[#allocation8 + $0x168] ss:$16 sps:$4 sm:$0xff]   ;;  %v4931_v59 = vld [vmem:[#allocation8 + $0x184] ss:$16 sps:$4 sm:$0xff]  }
 0x10b   :  { %1403 = vmatprep.subr.bf16.mxu0 %v4839_v60  ;;  %1526 = vmatprep.subr.bf16.mxu1 %v4842_v61  ;;  %v4934_v60 = vld [vmem:[#allocation8 + $0x18c] ss:$16 sps:$4 sm:$0xff]   ;;  %v4929_v61 = vld [vmem:[#allocation8 + $0x180] ss:$16 sps:$4 sm:$0xff]  }
 0x10e   :  { %1404 = vmatpush1.bf16.msra.mxu0 %v4837_v62  ;;  %1527 = vmatpush1.bf16.msra.mxu1 %v4840_v63  ;;  %v4932_v62 = vld [vmem:[#allocation8 + $0x188] ss:$16 sps:$4 sm:$0xff]   ;;  %v4937_v63 = vld [vmem:[#allocation8 + $0x1a4] ss:$16 sps:$4 sm:$0xff]  }
 0x10f   :  { %1405 = vmatprep.subr.bf16.mxu0 %v4845_v0  ;;  %1528 = vmatprep.subr.bf16.mxu1 %v4848_v1  ;;  %v4940_v0 = vld [vmem:[#allocation8 + $0x1ac] ss:$16 sps:$4 sm:$0xff]   ;;  %v4935_v1 = vld [vmem:[#allocation8 + $0x1a0] ss:$16 sps:$4 sm:$0xff]  }
 0x112   :  { %1406 = vmatpush1.bf16.msra.mxu0 %v4843_v2  ;;  %1529 = vmatpush1.bf16.msra.mxu1 %v4846_v3  ;;  %v4938_v2 = vld [vmem:[#allocation8 + $0x1a8] ss:$16 sps:$4 sm:$0xff]   ;;  %v4943_v3 = vld [vmem:[#allocation8 + $0x1c4] ss:$16 sps:$4 sm:$0xff]  }
 0x113   :  { %1407 = vmatprep.subr.bf16.mxu0 %v4851_v4  ;;  %1530 = vmatprep.subr.bf16.mxu1 %v4854_v5  ;;  %v4946_v4 = vld [vmem:[#allocation8 + $0x1cc] ss:$16 sps:$4 sm:$0xff]   ;;  %v4941_v5 = vld [vmem:[#allocation8 + $0x1c0] ss:$16 sps:$4 sm:$0xff]  }
 0x116   :  { %1408 = vmatpush1.bf16.msra.mxu0 %v4849_v6  ;;  %1531 = vmatpush1.bf16.msra.mxu1 %v4852_v7  ;;  %v4944_v6 = vld [vmem:[#allocation8 + $0x1c8] ss:$16 sps:$4 sm:$0xff]   ;;  %v4949_v7 = vld [vmem:[#allocation8 + $0x1e4] ss:$16 sps:$4 sm:$0xff]  }
 0x117   :  { %2743 = vmatprep.subr.bf16.mxu0 %v4859_v8  ;;  %2866 = vmatprep.subr.bf16.mxu1 %v4862_v9  ;;  %v4952_v8 = vld [vmem:[#allocation8 + $0x1ec] ss:$16 sps:$4 sm:$0xff]   ;;  %v4947_v9 = vld [vmem:[#allocation8 + $0x1e0] ss:$16 sps:$4 sm:$0xff]  }
 0x119   :  { %1410 = vmatmul.mubr.bf16.vlgmr.msra.gmra.mrb[0].mxu0 %v3988_v12  ;;  %1533 = vmatmul.mubr.bf16.vlgmr.msra.gmra.mrb[0].mxu1 %v3988_v12  ;;  %v4957_v12 = vld [vmem:[#allocation8 + $0x204] ss:$16 sps:$4 sm:$0xff]  }
 0x11a   :  { %2744 = vmatpush1.bf16.msra.mxu0 %v4857_v10  ;;  %2867 = vmatpush1.bf16.msra.mxu1 %v4860_v13  ;;  %v4950_v10 = vld [vmem:[#allocation8 + $0x1e8] ss:$16 sps:$4 sm:$0xff]   ;;  %v4960_v13 = vld [vmem:[#allocation8 + $0x20c] ss:$16 sps:$4 sm:$0xff]  }
 0x11b   :  { %2745 = vmatprep.subr.bf16.mxu0 %v4865_v15  ;;  %2868 = vmatprep.subr.bf16.mxu1 %v4868_v16  ;;  %v4955_v15 = vld [vmem:[#allocation8 + $0x200] ss:$16 sps:$4 sm:$0xff]   ;;  %v4182_v16 = vcombine.low %v5597_v14, %v5597_v14  ;;  %v4969_v14 = vld [vmem:[#allocation8 + $0x244] ss:$16 sps:$4 sm:$0xff]  }
 0x11c   :  { %2775 = vmatprep.mubr.bf16.mxu0 %v4183_v17  ;;  %2898 = vmatprep.mubr.bf16.mxu1 %v4183_v17  ;;  %v5603_v17 = vld [vmem:[#allocation5 + $0x8] sm:$0xff] }
 0x11e   :  { %2746 = vmatpush1.bf16.msra.mxu0 %v4863_v18  ;;  %2869 = vmatpush1.bf16.msra.mxu1 %v4866_v19  ;;  %v4958_v18 = vld [vmem:[#allocation8 + $0x208] ss:$16 sps:$4 sm:$0xff]   ;;  %v4963_v19 = vld [vmem:[#allocation8 + $0x224] ss:$16 sps:$4 sm:$0xff]  }
 0x11f   :  { %2747 = vmatprep.subr.bf16.mxu0 %v4871_v20  ;;  %2870 = vmatprep.subr.bf16.mxu1 %v4874_v11  ;;  %v4966_v20 = vld [vmem:[#allocation8 + $0x22c] ss:$16 sps:$4 sm:$0xff]   ;;  %v4185_v11 = vcombine.high %v5603_v17, %v5603_v17 }
 0x122   :  { %2748 = vmatpush1.bf16.msra.mxu0 %v4869_v21  ;;  %2871 = vmatpush1.bf16.msra.mxu1 %v4872_v22  ;;  %v4961_v21 = vld [vmem:[#allocation8 + $0x220] ss:$16 sps:$4 sm:$0xff]   ;;  %v4964_v22 = vld [vmem:[#allocation8 + $0x228] ss:$16 sps:$4 sm:$0xff]  }
 0x123   :  { %2749 = vmatprep.subr.bf16.mxu0 %v4877_v23  ;;  %2872 = vmatprep.subr.bf16.mxu1 %v4880_v24  ;;  %v4972_v23 = vld [vmem:[#allocation8 + $0x24c] ss:$16 sps:$4 sm:$0xff]   ;;  %v4967_v24 = vld [vmem:[#allocation8 + $0x240] ss:$16 sps:$4 sm:$0xff]  }
 0x126   :  { %2750 = vmatpush1.bf16.msra.mxu0 %v4875_v25  ;;  %2873 = vmatpush1.bf16.msra.mxu1 %v4878_v26  ;;  %v4970_v25 = vld [vmem:[#allocation8 + $0x248] ss:$16 sps:$4 sm:$0xff]   ;;  %v4975_v26 = vld [vmem:[#allocation8 + $0x264] ss:$16 sps:$4 sm:$0xff]  }
 0x127   :  { %2751 = vmatprep.subr.bf16.mxu0 %v4883_v27  ;;  %2874 = vmatprep.subr.bf16.mxu1 %v4886_v28  ;;  %v4978_v27 = vld [vmem:[#allocation8 + $0x26c] ss:$16 sps:$4 sm:$0xff]   ;;  %v4973_v28 = vld [vmem:[#allocation8 + $0x260] ss:$16 sps:$4 sm:$0xff]  }
 0x12a   :  { %2752 = vmatpush1.bf16.msra.mxu0 %v4881_v29  ;;  %2875 = vmatpush1.bf16.msra.mxu1 %v4884_v30  ;;  %v4976_v29 = vld [vmem:[#allocation8 + $0x268] ss:$16 sps:$4 sm:$0xff]   ;;  %v4981_v30 = vld [vmem:[#allocation8 + $0x284] ss:$16 sps:$4 sm:$0xff]  }
 0x12b   :  { %2753 = vmatprep.subr.bf16.mxu0 %v4889_v31  ;;  %2876 = vmatprep.subr.bf16.mxu1 %v4892_v32  ;;  %v4984_v31 = vld [vmem:[#allocation8 + $0x28c] ss:$16 sps:$4 sm:$0xff]   ;;  %v4979_v32 = vld [vmem:[#allocation8 + $0x280] ss:$16 sps:$4 sm:$0xff]  }
 0x12e   :  { %2754 = vmatpush1.bf16.msra.mxu0 %v4887_v33  ;;  %2877 = vmatpush1.bf16.msra.mxu1 %v4890_v34  ;;  %v4982_v33 = vld [vmem:[#allocation8 + $0x288] ss:$16 sps:$4 sm:$0xff]   ;;  %v4987_v34 = vld [vmem:[#allocation8 + $0x2a4] ss:$16 sps:$4 sm:$0xff]  }
 0x12f   :  { %2755 = vmatprep.subr.bf16.mxu0 %v4895_v35  ;;  %2878 = vmatprep.subr.bf16.mxu1 %v4898_v36  ;;  %v4990_v35 = vld [vmem:[#allocation8 + $0x2ac] ss:$16 sps:$4 sm:$0xff]   ;;  %v4985_v36 = vld [vmem:[#allocation8 + $0x2a0] ss:$16 sps:$4 sm:$0xff]  }
 0x132   :  { %2756 = vmatpush1.bf16.msra.mxu0 %v4893_v37  ;;  %2879 = vmatpush1.bf16.msra.mxu1 %v4896_v38  ;;  %v4988_v37 = vld [vmem:[#allocation8 + $0x2a8] ss:$16 sps:$4 sm:$0xff]   ;;  %v4993_v38 = vld [vmem:[#allocation8 + $0x2c4] ss:$16 sps:$4 sm:$0xff]  }
 0x133   :  { %2757 = vmatprep.subr.bf16.mxu0 %v4901_v39  ;;  %2880 = vmatprep.subr.bf16.mxu1 %v4904_v40  ;;  %v4996_v39 = vld [vmem:[#allocation8 + $0x2cc] ss:$16 sps:$4 sm:$0xff]   ;;  %v4991_v40 = vld [vmem:[#allocation8 + $0x2c0] ss:$16 sps:$4 sm:$0xff]  }
 0x136   :  { %2758 = vmatpush1.bf16.msra.mxu0 %v4899_v41  ;;  %2881 = vmatpush1.bf16.msra.mxu1 %v4902_v42  ;;  %v4994_v41 = vld [vmem:[#allocation8 + $0x2c8] ss:$16 sps:$4 sm:$0xff]   ;;  %v4999_v42 = vld [vmem:[#allocation8 + $0x2e4] ss:$16 sps:$4 sm:$0xff]  }
 0x137   :  { %2759 = vmatprep.subr.bf16.mxu0 %v4907_v43  ;;  %2882 = vmatprep.subr.bf16.mxu1 %v4910_v44  ;;  %v5002_v43 = vld [vmem:[#allocation8 + $0x2ec] ss:$16 sps:$4 sm:$0xff]   ;;  %v4997_v44 = vld [vmem:[#allocation8 + $0x2e0] ss:$16 sps:$4 sm:$0xff]  }
 0x13a   :  { %2760 = vmatpush1.bf16.msra.mxu0 %v4905_v45  ;;  %2883 = vmatpush1.bf16.msra.mxu1 %v4908_v46  ;;  %v5000_v45 = vld [vmem:[#allocation8 + $0x2e8] ss:$16 sps:$4 sm:$0xff]   ;;  %v5005_v46 = vld [vmem:[#allocation8 + $0x304] ss:$16 sps:$4 sm:$0xff]  }
 0x13b   :  { %2761 = vmatprep.subr.bf16.mxu0 %v4913_v47  ;;  %2884 = vmatprep.subr.bf16.mxu1 %v4916_v48  ;;  %v5008_v47 = vld [vmem:[#allocation8 + $0x30c] ss:$16 sps:$4 sm:$0xff]   ;;  %v5003_v48 = vld [vmem:[#allocation8 + $0x300] ss:$16 sps:$4 sm:$0xff]  }
 0x13e   :  { %2762 = vmatpush1.bf16.msra.mxu0 %v4911_v49  ;;  %2885 = vmatpush1.bf16.msra.mxu1 %v4914_v50  ;;  %v5006_v49 = vld [vmem:[#allocation8 + $0x308] ss:$16 sps:$4 sm:$0xff]   ;;  %v5011_v50 = vld [vmem:[#allocation8 + $0x324] ss:$16 sps:$4 sm:$0xff]  }
 0x13f   :  { %2763 = vmatprep.subr.bf16.mxu0 %v4919_v51  ;;  %2886 = vmatprep.subr.bf16.mxu1 %v4922_v52  ;;  %v5014_v51 = vld [vmem:[#allocation8 + $0x32c] ss:$16 sps:$4 sm:$0xff]   ;;  %v5009_v52 = vld [vmem:[#allocation8 + $0x320] ss:$16 sps:$4 sm:$0xff]  }
 0x142   :  { %2764 = vmatpush1.bf16.msra.mxu0 %v4917_v53  ;;  %2887 = vmatpush1.bf16.msra.mxu1 %v4920_v54  ;;  %v5012_v53 = vld [vmem:[#allocation8 + $0x328] ss:$16 sps:$4 sm:$0xff]   ;;  %v5017_v54 = vld [vmem:[#allocation8 + $0x344] ss:$16 sps:$4 sm:$0xff]  }
 0x143   :  { %2765 = vmatprep.subr.bf16.mxu0 %v4925_v55  ;;  %2888 = vmatprep.subr.bf16.mxu1 %v4928_v56  ;;  %v5020_v55 = vld [vmem:[#allocation8 + $0x34c] ss:$16 sps:$4 sm:$0xff]   ;;  %v5015_v56 = vld [vmem:[#allocation8 + $0x340] ss:$16 sps:$4 sm:$0xff]  }
 0x146   :  { %2766 = vmatpush1.bf16.msra.mxu0 %v4923_v57  ;;  %2889 = vmatpush1.bf16.msra.mxu1 %v4926_v58  ;;  %v5018_v57 = vld [vmem:[#allocation8 + $0x348] ss:$16 sps:$4 sm:$0xff]   ;;  %v5023_v58 = vld [vmem:[#allocation8 + $0x364] ss:$16 sps:$4 sm:$0xff]  }
 0x147   :  { %2767 = vmatprep.subr.bf16.mxu0 %v4931_v59  ;;  %2890 = vmatprep.subr.bf16.mxu1 %v4934_v60  ;;  %v5026_v59 = vld [vmem:[#allocation8 + $0x36c] ss:$16 sps:$4 sm:$0xff]   ;;  %v5021_v60 = vld [vmem:[#allocation8 + $0x360] ss:$16 sps:$4 sm:$0xff]  }
 0x14a   :  { %2768 = vmatpush1.bf16.msra.mxu0 %v4929_v61  ;;  %2891 = vmatpush1.bf16.msra.mxu1 %v4932_v62  ;;  %v5024_v61 = vld [vmem:[#allocation8 + $0x368] ss:$16 sps:$4 sm:$0xff]   ;;  %v5029_v62 = vld [vmem:[#allocation8 + $0x384] ss:$16 sps:$4 sm:$0xff]  }
 0x14b   :  { %2769 = vmatprep.subr.bf16.mxu0 %v4937_v63  ;;  %2892 = vmatprep.subr.bf16.mxu1 %v4940_v0  ;;  %v5032_v63 = vld [vmem:[#allocation8 + $0x38c] ss:$16 sps:$4 sm:$0xff]   ;;  %v5027_v0 = vld [vmem:[#allocation8 + $0x380] ss:$16 sps:$4 sm:$0xff]  }
 0x14e   :  { %2770 = vmatpush1.bf16.msra.mxu0 %v4935_v1  ;;  %2893 = vmatpush1.bf16.msra.mxu1 %v4938_v2  ;;  %v5030_v1 = vld [vmem:[#allocation8 + $0x388] ss:$16 sps:$4 sm:$0xff]   ;;  %v5035_v2 = vld [vmem:[#allocation8 + $0x3a4] ss:$16 sps:$4 sm:$0xff]  }
 0x14f   :  { %2771 = vmatprep.subr.bf16.mxu0 %v4943_v3  ;;  %2894 = vmatprep.subr.bf16.mxu1 %v4946_v4  ;;  %v5038_v3 = vld [vmem:[#allocation8 + $0x3ac] ss:$16 sps:$4 sm:$0xff]   ;;  %v5033_v4 = vld [vmem:[#allocation8 + $0x3a0] ss:$16 sps:$4 sm:$0xff]  }
 0x152   :  { %2772 = vmatpush1.bf16.msra.mxu0 %v4941_v5  ;;  %2895 = vmatpush1.bf16.msra.mxu1 %v4944_v6  ;;  %v5036_v5 = vld [vmem:[#allocation8 + $0x3a8] ss:$16 sps:$4 sm:$0xff]   ;;  %v5041_v6 = vld [vmem:[#allocation8 + $0x3c4] ss:$16 sps:$4 sm:$0xff]  }
 0x153   :  { %2773 = vmatprep.subr.bf16.mxu0 %v4949_v7  ;;  %2896 = vmatprep.subr.bf16.mxu1 %v4952_v8  ;;  %v5044_v7 = vld [vmem:[#allocation8 + $0x3cc] ss:$16 sps:$4 sm:$0xff]   ;;  %v5039_v8 = vld [vmem:[#allocation8 + $0x3c0] ss:$16 sps:$4 sm:$0xff]  }
 0x156   :  { %2774 = vmatpush1.bf16.msra.mxu0 %v4947_v9  ;;  %2897 = vmatpush1.bf16.msra.mxu1 %v4950_v10  ;;  %v5042_v9 = vld [vmem:[#allocation8 + $0x3c8] ss:$16 sps:$4 sm:$0xff]   ;;  %v5047_v10 = vld [vmem:[#allocation8 + $0x3e4] ss:$16 sps:$4 sm:$0xff]  }
 0x157   :  { %2784 = vmatprep.subr.bf16.mxu0 %v4957_v12  ;;  %2907 = vmatprep.subr.bf16.mxu1 %v4960_v13  ;;  %v5050_v12 = vld [vmem:[#allocation8 + $0x3ec] ss:$16 sps:$4 sm:$0xff]   ;;  %v5045_v13 = vld [vmem:[#allocation8 + $0x3e0] ss:$16 sps:$4 sm:$0xff]  }
 0x159   :  { %2776 = vmatmul.mubr.bf16.vlgmr.msra.gmra.mrb[4].mxu0 %v4182_v16  ;;  %2899 = vmatmul.mubr.bf16.vlgmr.msra.gmra.mrb[4].mxu1 %v4182_v16  ;;  %v5055_v16 = vld [vmem:[#allocation8 + $0x404] ss:$16 sps:$4 sm:$0xff]  }
 0x15a   :  { %2785 = vmatpush1.bf16.msra.mxu0 %v4955_v15  ;;  %2908 = vmatpush1.bf16.msra.mxu1 %v4958_v18  ;;  %v5048_v15 = vld [vmem:[#allocation8 + $0x3e8] ss:$16 sps:$4 sm:$0xff]   ;;  %v5058_v18 = vld [vmem:[#allocation8 + $0x40c] ss:$16 sps:$4 sm:$0xff]  }
 0x15b   :  { %2786 = vmatprep.subr.bf16.mxu0 %v4963_v19  ;;  %2909 = vmatprep.subr.bf16.mxu1 %v4966_v20  ;;  %v5607_v19 = vld [vmem:[#allocation5 + $0x10] sm:$0xff]  ;;  %v5053_v20 = vld [vmem:[#allocation8 + $0x400] ss:$16 sps:$4 sm:$0xff]  }
 0x15c   :  { %2816 = vmatprep.mubr.bf16.mxu0 %v4185_v11  ;;  %2939 = vmatprep.mubr.bf16.mxu1 %v4185_v11  ;;  %v5056_v11 = vld [vmem:[#allocation8 + $0x408] ss:$16 sps:$4 sm:$0xff]  }
 0x15e   :  { %2787 = vmatpush1.bf16.msra.mxu0 %v4961_v21  ;;  %2910 = vmatpush1.bf16.msra.mxu1 %v4964_v22  ;;  %v4184_v21 = vcombine.low %v5603_v17, %v5603_v17  ;;  %v5061_v22 = vld [vmem:[#allocation8 + $0x424] ss:$16 sps:$4 sm:$0xff]   ;;  %v5065_v17 = vld [vmem:[#allocation8 + $0x440] ss:$16 sps:$4 sm:$0xff]  }
 0x15f   :  { %2788 = vmatprep.subr.bf16.mxu0 %v4969_v14  ;;  %2911 = vmatprep.subr.bf16.mxu1 %v4972_v23  ;;  %v5064_v14 = vld [vmem:[#allocation8 + $0x42c] ss:$16 sps:$4 sm:$0xff]   ;;  %v4187_v23 = vcombine.high %v5607_v19, %v5607_v19 }
 0x162   :  { %2789 = vmatpush1.bf16.msra.mxu0 %v4967_v24  ;;  %2912 = vmatpush1.bf16.msra.mxu1 %v4970_v25  ;;  %v5059_v24 = vld [vmem:[#allocation8 + $0x420] ss:$16 sps:$4 sm:$0xff]   ;;  %v5062_v25 = vld [vmem:[#allocation8 + $0x428] ss:$16 sps:$4 sm:$0xff]  }
 0x163   :  { %2790 = vmatprep.subr.bf16.mxu0 %v4975_v26  ;;  %2913 = vmatprep.subr.bf16.mxu1 %v4978_v27  ;;  %v5067_v26 = vld [vmem:[#allocation8 + $0x444] ss:$16 sps:$4 sm:$0xff]   ;;  %v5070_v27 = vld [vmem:[#allocation8 + $0x44c] ss:$16 sps:$4 sm:$0xff]  }
 0x166   :  { %2791 = vmatpush1.bf16.msra.mxu0 %v4973_v28  ;;  %2914 = vmatpush1.bf16.msra.mxu1 %v4976_v29  ;;  %v5068_v28 = vld [vmem:[#allocation8 + $0x448] ss:$16 sps:$4 sm:$0xff]   ;;  %v5073_v29 = vld [vmem:[#allocation8 + $0x464] ss:$16 sps:$4 sm:$0xff]  }
 0x167   :  { %2792 = vmatprep.subr.bf16.mxu0 %v4981_v30  ;;  %2915 = vmatprep.subr.bf16.mxu1 %v4984_v31  ;;  %v5076_v30 = vld [vmem:[#allocation8 + $0x46c] ss:$16 sps:$4 sm:$0xff]   ;;  %v5071_v31 = vld [vmem:[#allocation8 + $0x460] ss:$16 sps:$4 sm:$0xff]  }
 0x16a   :  { %2793 = vmatpush1.bf16.msra.mxu0 %v4979_v32  ;;  %2916 = vmatpush1.bf16.msra.mxu1 %v4982_v33  ;;  %v5074_v32 = vld [vmem:[#allocation8 + $0x468] ss:$16 sps:$4 sm:$0xff]   ;;  %v5079_v33 = vld [vmem:[#allocation8 + $0x484] ss:$16 sps:$4 sm:$0xff]  }
 0x16b   :  { %2794 = vmatprep.subr.bf16.mxu0 %v4987_v34  ;;  %2917 = vmatprep.subr.bf16.mxu1 %v4990_v35  ;;  %v5082_v34 = vld [vmem:[#allocation8 + $0x48c] ss:$16 sps:$4 sm:$0xff]   ;;  %v5077_v35 = vld [vmem:[#allocation8 + $0x480] ss:$16 sps:$4 sm:$0xff]  }
 0x16e   :  { %2795 = vmatpush1.bf16.msra.mxu0 %v4985_v36  ;;  %2918 = vmatpush1.bf16.msra.mxu1 %v4988_v37  ;;  %v5080_v36 = vld [vmem:[#allocation8 + $0x488] ss:$16 sps:$4 sm:$0xff]   ;;  %v5085_v37 = vld [vmem:[#allocation8 + $0x4a4] ss:$16 sps:$4 sm:$0xff]  }
 0x16f   :  { %2796 = vmatprep.subr.bf16.mxu0 %v4993_v38  ;;  %2919 = vmatprep.subr.bf16.mxu1 %v4996_v39  ;;  %v5088_v38 = vld [vmem:[#allocation8 + $0x4ac] ss:$16 sps:$4 sm:$0xff]   ;;  %v5083_v39 = vld [vmem:[#allocation8 + $0x4a0] ss:$16 sps:$4 sm:$0xff]  }
 0x172   :  { %2797 = vmatpush1.bf16.msra.mxu0 %v4991_v40  ;;  %2920 = vmatpush1.bf16.msra.mxu1 %v4994_v41  ;;  %v5086_v40 = vld [vmem:[#allocation8 + $0x4a8] ss:$16 sps:$4 sm:$0xff]   ;;  %v5091_v41 = vld [vmem:[#allocation8 + $0x4c4] ss:$16 sps:$4 sm:$0xff]  }
 0x173   :  { %2798 = vmatprep.subr.bf16.mxu0 %v4999_v42  ;;  %2921 = vmatprep.subr.bf16.mxu1 %v5002_v43  ;;  %v5094_v42 = vld [vmem:[#allocation8 + $0x4cc] ss:$16 sps:$4 sm:$0xff]   ;;  %v5089_v43 = vld [vmem:[#allocation8 + $0x4c0] ss:$16 sps:$4 sm:$0xff]  }
 0x176   :  { %2799 = vmatpush1.bf16.msra.mxu0 %v4997_v44  ;;  %2922 = vmatpush1.bf16.msra.mxu1 %v5000_v45  ;;  %v5092_v44 = vld [vmem:[#allocation8 + $0x4c8] ss:$16 sps:$4 sm:$0xff]   ;;  %v5097_v45 = vld [vmem:[#allocation8 + $0x4e4] ss:$16 sps:$4 sm:$0xff]  }
 0x177   :  { %2800 = vmatprep.subr.bf16.mxu0 %v5005_v46  ;;  %2923 = vmatprep.subr.bf16.mxu1 %v5008_v47  ;;  %v5100_v46 = vld [vmem:[#allocation8 + $0x4ec] ss:$16 sps:$4 sm:$0xff]   ;;  %v5095_v47 = vld [vmem:[#allocation8 + $0x4e0] ss:$16 sps:$4 sm:$0xff]  }
 0x17a   :  { %2801 = vmatpush1.bf16.msra.mxu0 %v5003_v48  ;;  %2924 = vmatpush1.bf16.msra.mxu1 %v5006_v49  ;;  %v5098_v48 = vld [vmem:[#allocation8 + $0x4e8] ss:$16 sps:$4 sm:$0xff]   ;;  %v5103_v49 = vld [vmem:[#allocation8 + $0x504] ss:$16 sps:$4 sm:$0xff]  }
 0x17b   :  { %2802 = vmatprep.subr.bf16.mxu0 %v5011_v50  ;;  %2925 = vmatprep.subr.bf16.mxu1 %v5014_v51  ;;  %v5106_v50 = vld [vmem:[#allocation8 + $0x50c] ss:$16 sps:$4 sm:$0xff]   ;;  %v5101_v51 = vld [vmem:[#allocation8 + $0x500] ss:$16 sps:$4 sm:$0xff]  }
 0x17e   :  { %2803 = vmatpush1.bf16.msra.mxu0 %v5009_v52  ;;  %2926 = vmatpush1.bf16.msra.mxu1 %v5012_v53  ;;  %v5104_v52 = vld [vmem:[#allocation8 + $0x508] ss:$16 sps:$4 sm:$0xff]   ;;  %v5109_v53 = vld [vmem:[#allocation8 + $0x524] ss:$16 sps:$4 sm:$0xff]  }
 0x17f   :  { %2804 = vmatprep.subr.bf16.mxu0 %v5017_v54  ;;  %2927 = vmatprep.subr.bf16.mxu1 %v5020_v55  ;;  %v5112_v54 = vld [vmem:[#allocation8 + $0x52c] ss:$16 sps:$4 sm:$0xff]   ;;  %v5107_v55 = vld [vmem:[#allocation8 + $0x520] ss:$16 sps:$4 sm:$0xff]  }
 0x182   :  { %2805 = vmatpush1.bf16.msra.mxu0 %v5015_v56  ;;  %2928 = vmatpush1.bf16.msra.mxu1 %v5018_v57  ;;  %v5110_v56 = vld [vmem:[#allocation8 + $0x528] ss:$16 sps:$4 sm:$0xff]   ;;  %v5115_v57 = vld [vmem:[#allocation8 + $0x544] ss:$16 sps:$4 sm:$0xff]  }
 0x183   :  { %2806 = vmatprep.subr.bf16.mxu0 %v5023_v58  ;;  %2929 = vmatprep.subr.bf16.mxu1 %v5026_v59  ;;  %v5118_v58 = vld [vmem:[#allocation8 + $0x54c] ss:$16 sps:$4 sm:$0xff]   ;;  %v5113_v59 = vld [vmem:[#allocation8 + $0x540] ss:$16 sps:$4 sm:$0xff]  }
 0x186   :  { %2807 = vmatpush1.bf16.msra.mxu0 %v5021_v60  ;;  %2930 = vmatpush1.bf16.msra.mxu1 %v5024_v61  ;;  %v5116_v60 = vld [vmem:[#allocation8 + $0x548] ss:$16 sps:$4 sm:$0xff]   ;;  %v5121_v61 = vld [vmem:[#allocation8 + $0x564] ss:$16 sps:$4 sm:$0xff]  }
 0x187   :  { %2808 = vmatprep.subr.bf16.mxu0 %v5029_v62  ;;  %2931 = vmatprep.subr.bf16.mxu1 %v5032_v63  ;;  %v5124_v62 = vld [vmem:[#allocation8 + $0x56c] ss:$16 sps:$4 sm:$0xff]   ;;  %v5119_v63 = vld [vmem:[#allocation8 + $0x560] ss:$16 sps:$4 sm:$0xff]  }
 0x18a   :  { %2809 = vmatpush1.bf16.msra.mxu0 %v5027_v0  ;;  %2932 = vmatpush1.bf16.msra.mxu1 %v5030_v1  ;;  %v5122_v0 = vld [vmem:[#allocation8 + $0x568] ss:$16 sps:$4 sm:$0xff]   ;;  %v5127_v1 = vld [vmem:[#allocation8 + $0x584] ss:$16 sps:$4 sm:$0xff]  }
 0x18b   :  { %2810 = vmatprep.subr.bf16.mxu0 %v5035_v2  ;;  %2933 = vmatprep.subr.bf16.mxu1 %v5038_v3  ;;  %v5130_v2 = vld [vmem:[#allocation8 + $0x58c] ss:$16 sps:$4 sm:$0xff]   ;;  %v5125_v3 = vld [vmem:[#allocation8 + $0x580] ss:$16 sps:$4 sm:$0xff]  }
 0x18e   :  { %2811 = vmatpush1.bf16.msra.mxu0 %v5033_v4  ;;  %2934 = vmatpush1.bf16.msra.mxu1 %v5036_v5  ;;  %v5128_v4 = vld [vmem:[#allocation8 + $0x588] ss:$16 sps:$4 sm:$0xff]   ;;  %v5133_v5 = vld [vmem:[#allocation8 + $0x5a4] ss:$16 sps:$4 sm:$0xff]  }
 0x18f   :  { %2812 = vmatprep.subr.bf16.mxu0 %v5041_v6  ;;  %2935 = vmatprep.subr.bf16.mxu1 %v5044_v7  ;;  %v5136_v6 = vld [vmem:[#allocation8 + $0x5ac] ss:$16 sps:$4 sm:$0xff]   ;;  %v5131_v7 = vld [vmem:[#allocation8 + $0x5a0] ss:$16 sps:$4 sm:$0xff]  }
 0x192   :  { %2813 = vmatpush1.bf16.msra.mxu0 %v5039_v8  ;;  %2936 = vmatpush1.bf16.msra.mxu1 %v5042_v9  ;;  %v5134_v8 = vld [vmem:[#allocation8 + $0x5a8] ss:$16 sps:$4 sm:$0xff]   ;;  %v5139_v9 = vld [vmem:[#allocation8 + $0x5c4] ss:$16 sps:$4 sm:$0xff]  }
 0x193   :  { %2814 = vmatprep.subr.bf16.mxu0 %v5047_v10  ;;  %2937 = vmatprep.subr.bf16.mxu1 %v5050_v12  ;;  %v5142_v10 = vld [vmem:[#allocation8 + $0x5cc] ss:$16 sps:$4 sm:$0xff]   ;;  %v5137_v12 = vld [vmem:[#allocation8 + $0x5c0] ss:$16 sps:$4 sm:$0xff]  }
 0x196   :  { %2815 = vmatpush1.bf16.msra.mxu0 %v5045_v13  ;;  %2938 = vmatpush1.bf16.msra.mxu1 %v5048_v15  ;;  %v5140_v13 = vld [vmem:[#allocation8 + $0x5c8] ss:$16 sps:$4 sm:$0xff]   ;;  %v5145_v15 = vld [vmem:[#allocation8 + $0x5e4] ss:$16 sps:$4 sm:$0xff]  }
 0x197   :  { %2825 = vmatprep.subr.bf16.mxu0 %v5055_v16  ;;  %2948 = vmatprep.subr.bf16.mxu1 %v5058_v18  ;;  %v5148_v16 = vld [vmem:[#allocation8 + $0x5ec] ss:$16 sps:$4 sm:$0xff]   ;;  %v5143_v18 = vld [vmem:[#allocation8 + $0x5e0] ss:$16 sps:$4 sm:$0xff]  }
 0x199   :  { %2817 = vmatmul.mubr.bf16.vlgmr.msra.gmra.mrb[4].mxu0 %v4184_v21  ;;  %2940 = vmatmul.mubr.bf16.vlgmr.msra.gmra.mrb[4].mxu1 %v4184_v21  ;;  %v5156_v21 = vld [vmem:[#allocation10 + $0xc] ss:$16 sps:$4 sm:$0xff]  }
 0x19a   :  { %2826 = vmatpush1.bf16.msra.mxu0 %v5053_v20  ;;  %2949 = vmatpush1.bf16.msra.mxu1 %v5056_v11  ;;  %v5146_v20 = vld [vmem:[#allocation8 + $0x5e8] ss:$16 sps:$4 sm:$0xff]   ;;  %v5153_v11 = vld [vmem:[#allocation10 + $0x4] ss:$16 sps:$4 sm:$0xff]  }
 0x19b   :  { %2827 = vmatprep.subr.bf16.mxu0 %v5061_v22  ;;  %2950 = vmatprep.subr.bf16.mxu1 %v5064_v14  ;;  %v4186_v22 = vcombine.low %v5607_v19, %v5607_v19  ;;  %v5151_v14 = vld [vmem:[#allocation10] ss:$16 sps:$4 sm:$0xff]  }
 0x19c   :  { %2857 = vmatprep.mubr.bf16.mxu0 %v4187_v23  ;;  %2980 = vmatprep.mubr.bf16.mxu1 %v4187_v23  ;;  %v5154_v23 = vld [vmem:[#allocation10 + $0x8] ss:$16 sps:$4 sm:$0xff]   ;;  %v5163_v19 = vld [vmem:[#allocation10 + $0x40] ss:$16 sps:$4 sm:$0xff]  }
 0x19e   :  { %2828 = vmatpush1.bf16.msra.mxu0 %v5059_v24  ;;  %2951 = vmatpush1.bf16.msra.mxu1 %v5062_v25  ;;  %v5159_v24 = vld [vmem:[#allocation10 + $0x24] ss:$16 sps:$4 sm:$0xff]   ;;  %v5162_v25 = vld [vmem:[#allocation10 + $0x2c] ss:$16 sps:$4 sm:$0xff]  }
 0x19f   :  { %2829 = vmatprep.subr.bf16.mxu0 %v5067_v26  ;;  %2952 = vmatprep.subr.bf16.mxu1 %v5070_v27  ;;  %v5157_v26 = vld [vmem:[#allocation10 + $0x20] ss:$16 sps:$4 sm:$0xff]   ;;  %v5160_v27 = vld [vmem:[#allocation10 + $0x28] ss:$16 sps:$4 sm:$0xff]  }
 0x1a2   :  { %2830 = vmatpush1.bf16.msra.mxu0 %v5065_v17  ;;  %2953 = vmatpush1.bf16.msra.mxu1 %v5068_v28  ;;  %v5165_v17 = vld [vmem:[#allocation10 + $0x44] ss:$16 sps:$4 sm:$0xff]   ;;  %v5168_v28 = vld [vmem:[#allocation10 + $0x4c] ss:$16 sps:$4 sm:$0xff]  }
 0x1a3   :  { %2831 = vmatprep.subr.bf16.mxu0 %v5073_v29  ;;  %2954 = vmatprep.subr.bf16.mxu1 %v5076_v30  ;;  %v294_v29 = vlaneseq  ;;  %v5166_v30 = vld [vmem:[#allocation10 + $0x48] ss:$16 sps:$4 sm:$0xff]  }
 0x1a6   :  { %2832 = vmatpush1.bf16.msra.mxu0 %v5071_v31  ;;  %2955 = vmatpush1.bf16.msra.mxu1 %v5074_v32  ;;  %v5171_v31 = vld [vmem:[#allocation10 + $0x64] ss:$16 sps:$4 sm:$0xff]   ;;  %v5174_v32 = vld [vmem:[#allocation10 + $0x6c] ss:$16 sps:$4 sm:$0xff]  }
 0x1a7   :  { %2833 = vmatprep.subr.bf16.mxu0 %v5079_v33  ;;  %2956 = vmatprep.subr.bf16.mxu1 %v5082_v34  ;;  %v5615_v33 = vshrl.u32 %v294_v29, 7  ;;  %v5169_v34 = vld [vmem:[#allocation10 + $0x60] ss:$16 sps:$4 sm:$0xff]  }
 0x1a9   :  { %v5646_v29 = vsub.s32 3, %v5615_v33 }
 0x1aa   :  { %2834 = vmatpush1.bf16.msra.mxu0 %v5077_v35  ;;  %2957 = vmatpush1.bf16.msra.mxu1 %v5080_v36  ;;  %v5172_v35 = vld [vmem:[#allocation10 + $0x68] ss:$16 sps:$4 sm:$0xff]   ;;  %v5177_v36 = vld [vmem:[#allocation10 + $0x84] ss:$16 sps:$4 sm:$0xff]  }
 0x1ab   :  { %2835 = vmatprep.subr.bf16.mxu0 %v5085_v37  ;;  %2958 = vmatprep.subr.bf16.mxu1 %v5088_v38  ;;  %v5180_v37 = vld [vmem:[#allocation10 + $0x8c] ss:$16 sps:$4 sm:$0xff]   ;;  %v5175_v38 = vld [vmem:[#allocation10 + $0x80] ss:$16 sps:$4 sm:$0xff]  }
 0x1ae   :  { %2836 = vmatpush1.bf16.msra.mxu0 %v5083_v39  ;;  %2959 = vmatpush1.bf16.msra.mxu1 %v5086_v40  ;;  %v5618_v39 = vsub.s32 2, %v5615_v33  ;;  %v5178_v40 = vld [vmem:[#allocation10 + $0x88] ss:$16 sps:$4 sm:$0xff]  }
 0x1af   :  { %2837 = vmatprep.subr.bf16.mxu0 %v5091_v41  ;;  %2960 = vmatprep.subr.bf16.mxu1 %v5094_v42  ;;  %v5623_v41 = vld [vmem:[%s5689_s3] sm:$0xf]  ;;  %v5626_v42 = vsub.s32 1, %v5615_v33 }
 0x1b2   :  { %2838 = vmatpush1.bf16.msra.mxu0 %v5089_v43  ;;  %2961 = vmatpush1.bf16.msra.mxu1 %v5092_v44  ;;  %v5183_v43 = vld [vmem:[#allocation10 + $0xa4] ss:$16 sps:$4 sm:$0xff]   ;;  %v5186_v44 = vld [vmem:[#allocation10 + $0xac] ss:$16 sps:$4 sm:$0xff]  }
 0x1b3   :  { %2839 = vmatprep.subr.bf16.mxu0 %v5097_v45  ;;  %2962 = vmatprep.subr.bf16.mxu1 %v5100_v46  ;;  %v305_v45 = vrot.slane %v5623_v41, %v5618_v39  ;;  %v301_v46 = vrot.slane %v5623_v41, %v5626_v42 }
 0x1b6   :  { %2840 = vmatpush1.bf16.msra.mxu0 %v5095_v47  ;;  %2963 = vmatpush1.bf16.msra.mxu1 %v5098_v48  ;;  %v5181_v47 = vld [vmem:[#allocation10 + $0xa0] ss:$16 sps:$4 sm:$0xff]   ;;  %v5184_v48 = vld [vmem:[#allocation10 + $0xa8] ss:$16 sps:$4 sm:$0xff]  }
 0x1b7   :  { %2841 = vmatprep.subr.bf16.mxu0 %v5103_v49  ;;  %2964 = vmatprep.subr.bf16.mxu1 %v5106_v50  ;;  %v5189_v49 = vld [vmem:[#allocation10 + $0xc4] ss:$16 sps:$4 sm:$0xff]   ;;  %v5192_v50 = vld [vmem:[#allocation10 + $0xcc] ss:$16 sps:$4 sm:$0xff]  }
 0x1ba   :  { %2842 = vmatpush1.bf16.msra.mxu0 %v5101_v51  ;;  %2965 = vmatpush1.bf16.msra.mxu1 %v5104_v52 }
 0x1bb   :  { %2843 = vmatprep.subr.bf16.mxu0 %v5109_v53  ;;  %2966 = vmatprep.subr.bf16.mxu1 %v5112_v54 }
 0x1be   :  { %2844 = vmatpush1.bf16.msra.mxu0 %v5107_v55  ;;  %2967 = vmatpush1.bf16.msra.mxu1 %v5110_v56 }
 0x1bf   :  { %2845 = vmatprep.subr.bf16.mxu0 %v5115_v57  ;;  %2968 = vmatprep.subr.bf16.mxu1 %v5118_v58 }
 0x1c2   :  { %2846 = vmatpush1.bf16.msra.mxu0 %v5113_v59  ;;  %2969 = vmatpush1.bf16.msra.mxu1 %v5116_v60  ;;  %v5187_v59 = vld [vmem:[#allocation10 + $0xc0] ss:$16 sps:$4 sm:$0xff]   ;;  %v5190_v60 = vld [vmem:[#allocation10 + $0xc8] ss:$16 sps:$4 sm:$0xff]  }
 0x1c3   :  { %2847 = vmatprep.subr.bf16.mxu0 %v5121_v61  ;;  %2970 = vmatprep.subr.bf16.mxu1 %v5124_v62 }
 0x1c6   :  { %2848 = vmatpush1.bf16.msra.mxu0 %v5119_v63  ;;  %2971 = vmatpush1.bf16.msra.mxu1 %v5122_v0  ;;  %v5195_v63 = vld [vmem:[#allocation10 + $0xe4] ss:$16 sps:$4 sm:$0xff]   ;;  %v5198_v0 = vld [vmem:[#allocation10 + $0xec] ss:$16 sps:$4 sm:$0xff]  }
 0x1c7   :  { %2849 = vmatprep.subr.bf16.mxu0 %v5127_v1  ;;  %2972 = vmatprep.subr.bf16.mxu1 %v5130_v2 }
 0x1ca   :  { %2850 = vmatpush1.bf16.msra.mxu0 %v5125_v3  ;;  %2973 = vmatpush1.bf16.msra.mxu1 %v5128_v4  ;;  %v5193_v3 = vld [vmem:[#allocation10 + $0xe0] ss:$16 sps:$4 sm:$0xff]   ;;  %v5196_v4 = vld [vmem:[#allocation10 + $0xe8] ss:$16 sps:$4 sm:$0xff]  }
 0x1cb   :  { %2851 = vmatprep.subr.bf16.mxu0 %v5133_v5  ;;  %2974 = vmatprep.subr.bf16.mxu1 %v5136_v6  ;;  %v5201_v5 = vld [vmem:[#allocation10 + $0x104] ss:$16 sps:$4 sm:$0xff]   ;;  %v5204_v6 = vld [vmem:[#allocation10 + $0x10c] ss:$16 sps:$4 sm:$0xff]  }
 0x1ce   :  { %2852 = vmatpush1.bf16.msra.mxu0 %v5131_v7  ;;  %2975 = vmatpush1.bf16.msra.mxu1 %v5134_v8  ;;  %v5199_v7 = vld [vmem:[#allocation10 + $0x100] ss:$16 sps:$4 sm:$0xff]   ;;  %v5202_v8 = vld [vmem:[#allocation10 + $0x108] ss:$16 sps:$4 sm:$0xff]  }
 0x1cf   :  { %2853 = vmatprep.subr.bf16.mxu0 %v5139_v9  ;;  %2976 = vmatprep.subr.bf16.mxu1 %v5142_v10  ;;  %v5207_v9 = vld [vmem:[#allocation10 + $0x124] ss:$16 sps:$4 sm:$0xff]   ;;  %v5210_v10 = vld [vmem:[#allocation10 + $0x12c] ss:$16 sps:$4 sm:$0xff]  }
 0x1d2   :  { %2854 = vmatpush1.bf16.msra.mxu0 %v5137_v12  ;;  %2977 = vmatpush1.bf16.msra.mxu1 %v5140_v13  ;;  %v5205_v12 = vld [vmem:[#allocation10 + $0x120] ss:$16 sps:$4 sm:$0xff]   ;;  %v5208_v13 = vld [vmem:[#allocation10 + $0x128] ss:$16 sps:$4 sm:$0xff]  }
 0x1d3   :  { %2855 = vmatprep.subr.bf16.mxu0 %v5145_v15  ;;  %2978 = vmatprep.subr.bf16.mxu1 %v5148_v16  ;;  %v5213_v15 = vld [vmem:[#allocation10 + $0x144] ss:$16 sps:$4 sm:$0xff]   ;;  %v5216_v16 = vld [vmem:[#allocation10 + $0x14c] ss:$16 sps:$4 sm:$0xff]  }
 0x1d6   :  { %2856 = vmatpush1.bf16.msra.mxu0 %v5143_v18  ;;  %2979 = vmatpush1.bf16.msra.mxu1 %v5146_v20  ;;  %v5211_v18 = vld [vmem:[#allocation10 + $0x140] ss:$16 sps:$4 sm:$0xff]   ;;  %v5214_v20 = vld [vmem:[#allocation10 + $0x148] ss:$16 sps:$4 sm:$0xff]  }
 0x1d7   :  { %3765 = vmatprep.subr.bf16.mxu0 %v5153_v11  ;;  %3847 = vmatprep.subr.bf16.mxu1 %v5156_v21  ;;  %v5219_v11 = vld [vmem:[#allocation10 + $0x164] ss:$16 sps:$4 sm:$0xff]   ;;  %v5222_v21 = vld [vmem:[#allocation10 + $0x16c] ss:$16 sps:$4 sm:$0xff]  }
 0x1d9   :  { %2858 = vmatmul.mubr.bf16.vlgmr.msra.gmra.mrb[4].mxu0 %v4186_v22  ;;  %2981 = vmatmul.mubr.bf16.vlgmr.msra.gmra.mrb[4].mxu1 %v4186_v22  ;;  %v5217_v22 = vld [vmem:[#allocation10 + $0x160] ss:$16 sps:$4 sm:$0xff]  }
 0x1da   :  { %3766 = vmatpush1.bf16.msra.mxu0 %v5151_v14  ;;  %3848 = vmatpush1.bf16.msra.mxu1 %v5154_v23  ;;  %v5220_v14 = vld [vmem:[#allocation10 + $0x168] ss:$16 sps:$4 sm:$0xff]   ;;  %v5225_v23 = vld [vmem:[#allocation10 + $0x184] ss:$16 sps:$4 sm:$0xff]  }
 0x1db   :  { %3767 = vmatprep.subr.bf16.mxu0 %v5159_v24  ;;  %3849 = vmatprep.subr.bf16.mxu1 %v5162_v25  ;;  %v5228_v24 = vld [vmem:[#allocation10 + $0x18c] ss:$16 sps:$4 sm:$0xff]   ;;  %v5223_v25 = vld [vmem:[#allocation10 + $0x180] ss:$16 sps:$4 sm:$0xff]  }
 0x1de   :  { %3768 = vmatpush1.bf16.msra.mxu0 %v5157_v26  ;;  %3850 = vmatpush1.bf16.msra.mxu1 %v5160_v27  ;;  %v5226_v26 = vld [vmem:[#allocation10 + $0x188] ss:$16 sps:$4 sm:$0xff]   ;;  %v5643_v27 = vsub.s32 0, %v5615_v33 }
 0x1df   :  { %3769 = vmatprep.subr.bf16.mxu0 %v5165_v17  ;;  %3851 = vmatprep.subr.bf16.mxu1 %v5168_v28  ;;  %v5231_v17 = vld [vmem:[#allocation10 + $0x1a4] ss:$16 sps:$4 sm:$0xff]   ;;  %v5234_v28 = vld [vmem:[#allocation10 + $0x1ac] ss:$16 sps:$4 sm:$0xff]  }
 0x1e2   :  { %3770 = vmatpush1.bf16.msra.mxu0 %v5163_v19  ;;  %3852 = vmatpush1.bf16.msra.mxu1 %v5166_v30  ;;  %v5229_v19 = vld [vmem:[#allocation10 + $0x1a0] ss:$16 sps:$4 sm:$0xff]   ;;  %v5232_v30 = vld [vmem:[#allocation10 + $0x1a8] ss:$16 sps:$4 sm:$0xff]  }
 0x1e3   :  { %3771 = vmatprep.subr.bf16.mxu0 %v5171_v31  ;;  %3853 = vmatprep.subr.bf16.mxu1 %v5174_v32  ;;  %v297_v31 = vrot.slane %v5623_v41, %v5643_v27  ;;  %v5237_v32 = vld [vmem:[#allocation10 + $0x1c4] ss:$16 sps:$4 sm:$0xff]  }
 0x1e6   :  { %3772 = vmatpush1.bf16.msra.mxu0 %v5169_v34  ;;  %3854 = vmatpush1.bf16.msra.mxu1 %v5172_v35  ;;  %v5240_v34 = vld [vmem:[#allocation10 + $0x1cc] ss:$16 sps:$4 sm:$0xff]   ;;  %v309_v35 = vrot.slane %v5623_v41, %v5646_v29  ;;  %v5249_v41 = vld [vmem:[#allocation10 + $0x204] ss:$16 sps:$4 sm:$0xff]  }
 0x1e7   :  { %3773 = vmatprep.subr.bf16.mxu0 %v5177_v36  ;;  %3855 = vmatprep.subr.bf16.mxu1 %v5180_v37  ;;  %v5235_v36 = vld [vmem:[#allocation10 + $0x1c0] ss:$16 sps:$4 sm:$0xff]   ;;  %v5238_v37 = vld [vmem:[#allocation10 + $0x1c8] ss:$16 sps:$4 sm:$0xff]  }
 0x1ea   :  { %3774 = vmatpush1.bf16.msra.mxu0 %v5175_v38  ;;  %3856 = vmatpush1.bf16.msra.mxu1 %v5178_v40  ;;  %v5243_v38 = vld [vmem:[#allocation10 + $0x1e4] ss:$16 sps:$4 sm:$0xff]   ;;  %v5246_v40 = vld [vmem:[#allocation10 + $0x1ec] ss:$16 sps:$4 sm:$0xff]  }
 0x1eb   :  { %3775 = vmatprep.subr.bf16.mxu0 %v5183_v43  ;;  %3857 = vmatprep.subr.bf16.mxu1 %v5186_v44  ;;  %v5241_v44 = vld [vmem:[#allocation10 + $0x1e0] ss:$16 sps:$4 sm:$0xff]  }
 0x1ec   :  { %v5632_v51 = vpop.f32.mrb[0].mxu0  ;;  %v1534_v52 = vpop.f32.mrb[0].mxu1 }
 0x1ed   :  { %v5634_v53 = vadd.f32 %v1534_v52, %v305_v45  ;;  %v1413_v54 = vpop.f32.mrb[1].mxu0  ;;  %v5636_v55 = vpop.f32.mrb[1].mxu1  ;;  %v4508_v33 = vadd.f32 %v5632_v51, %v297_v31  ;;  %v5244_v45 = vld [vmem:[#allocation10 + $0x1e8] ss:$16 sps:$4 sm:$0xff]   ;;  %v5307_v31 = vld [vmem:[#allocation10 + $0x340] ss:$16 sps:$4 sm:$0xff]  }
 0x1ee   :  { %v4509_v56 = vadd.f32 %v1413_v54, %v301_v46  ;;  %v1415_v57 = vpop.f32.mrb[2].mxu0  ;;  %v1538_v58 = vpop.f32.mrb[2].mxu1  ;;  %3776 = vmatpush1.bf16.msra.mxu0 %v5181_v47  ;;  %3858 = vmatpush1.bf16.msra.mxu1 %v5184_v48  ;;  %v4511_v43 = vadd.f32 %v5636_v55, %v309_v35  ;;  %v5252_v47 = vld [vmem:[#allocation10 + $0x20c] ss:$16 sps:$4 sm:$0xff]   ;;  %v5250_v51 = vld [vmem:[#allocation10 + $0x208] ss:$16 sps:$4 sm:$0xff]  }
 0x1ef   :  { %v1416_v61 = vpop.f32.mrb[3].mxu0  ;;  %v1539_v62 = vpop.f32.mrb[3].mxu1  ;;  %3777 = vmatprep.subr.bf16.mxu0 %v5189_v49  ;;  %3859 = vmatprep.subr.bf16.mxu1 %v5192_v50  ;;  %v5654_v46 = vmax.f32 %v4508_v33, 0.0  ;;  %v5247_v49 = vld [vmem:[#allocation10 + $0x200] ss:$16 sps:$4 sm:$0xff]  }
 0x1f0   :  { %v5638_v1 = vmax.f32 %v4509_v56, 0.0  ;;  %v5656_v48 = vmax.f32 %v4511_v43, 0.0  ;;  %v5255_v54 = vld [vmem:[#allocation10 + $0x224] ss:$16 sps:$4 sm:$0xff]   ;;  %v5258_v55 = vld [vmem:[#allocation10 + $0x22c] ss:$16 sps:$4 sm:$0xff]  }
 0x1f1   :  { %v2993_v50 = vpack.c.bf16 %v5654_v46, %v5654_v46  ;;  %v5253_v56 = vld [vmem:[#allocation10 + $0x220] ss:$16 sps:$4 sm:$0xff]   ;;  %v5256_v57 = vld [vmem:[#allocation10 + $0x228] ss:$16 sps:$4 sm:$0xff]   ;;  %v5261_v58 = vld [vmem:[#allocation10 + $0x244] ss:$16 sps:$4 sm:$0xff]  }
 0x1f2   :  { %v2994_v2 = vpack.c.bf16 %v5638_v1, %v5638_v1  ;;  %3778 = vmatpush1.bf16.msra.mxu0 %v5187_v59  ;;  %3860 = vmatpush1.bf16.msra.mxu1 %v5190_v60  ;;  %v2996_v52 = vpack.c.bf16 %v5656_v48, %v5656_v48  ;;  %v5264_v59 = vld [vmem:[#allocation10 + $0x24c] ss:$16 sps:$4 sm:$0xff]   ;;  %v5259_v60 = vld [vmem:[#allocation10 + $0x240] ss:$16 sps:$4 sm:$0xff]   ;;  %v5262_v61 = vld [vmem:[#allocation10 + $0x248] ss:$16 sps:$4 sm:$0xff]  }
 0x1f3   :  { %3779 = vmatprep.subr.bf16.mxu0 %v5195_v63  ;;  %3861 = vmatprep.subr.bf16.mxu1 %v5198_v0  ;;  %v5267_v62 = vld [vmem:[#allocation10 + $0x264] ss:$16 sps:$4 sm:$0xff]   ;;  %v5270_v63 = vld [vmem:[#allocation10 + $0x26c] ss:$16 sps:$4 sm:$0xff]   ;;  %v5265_v0 = vld [vmem:[#allocation10 + $0x260] ss:$16 sps:$4 sm:$0xff]  }
 0x1f4   :  { %3797 = vmatprep.mubr.bf16.mxu0 %v2994_v2  ;;  %3879 = vmatprep.mubr.bf16.mxu1 %v2994_v2  ;;  %v5268_v2 = vld [vmem:[#allocation10 + $0x268] ss:$16 sps:$4 sm:$0xff]   ;;  %v5318_v35 = vld [vmem:[#allocation10 + $0x36c] ss:$16 sps:$4 sm:$0xff]   ;;  %v5321_v33 = vld [vmem:[#allocation10 + $0x384] ss:$16 sps:$4 sm:$0xff]  }
 0x1f5   :  { %v5322_v43 = vld [vmem:[#allocation10 + $0x388] ss:$16 sps:$4 sm:$0xff]  }
 0x1f6   :  { %3780 = vmatpush1.bf16.msra.mxu0 %v5193_v3  ;;  %3862 = vmatpush1.bf16.msra.mxu1 %v5196_v4  ;;  %v5273_v3 = vld [vmem:[#allocation10 + $0x284] ss:$16 sps:$4 sm:$0xff]   ;;  %v5276_v4 = vld [vmem:[#allocation10 + $0x28c] ss:$16 sps:$4 sm:$0xff]  }
 0x1f7   :  { %3781 = vmatprep.subr.bf16.mxu0 %v5201_v5  ;;  %3863 = vmatprep.subr.bf16.mxu1 %v5204_v6  ;;  %v5271_v5 = vld [vmem:[#allocation10 + $0x280] ss:$16 sps:$4 sm:$0xff]   ;;  %v5274_v6 = vld [vmem:[#allocation10 + $0x288] ss:$16 sps:$4 sm:$0xff]  }
 0x1fa   :  { %3782 = vmatpush1.bf16.msra.mxu0 %v5199_v7  ;;  %3864 = vmatpush1.bf16.msra.mxu1 %v5202_v8  ;;  %v5279_v7 = vld [vmem:[#allocation10 + $0x2a4] ss:$16 sps:$4 sm:$0xff]   ;;  %v5282_v8 = vld [vmem:[#allocation10 + $0x2ac] ss:$16 sps:$4 sm:$0xff]  }
 0x1fb   :  { %3783 = vmatprep.subr.bf16.mxu0 %v5207_v9  ;;  %3865 = vmatprep.subr.bf16.mxu1 %v5210_v10  ;;  %v5277_v9 = vld [vmem:[#allocation10 + $0x2a0] ss:$16 sps:$4 sm:$0xff]   ;;  %v5280_v10 = vld [vmem:[#allocation10 + $0x2a8] ss:$16 sps:$4 sm:$0xff]  }
 0x1fe   :  { %3784 = vmatpush1.bf16.msra.mxu0 %v5205_v12  ;;  %3866 = vmatpush1.bf16.msra.mxu1 %v5208_v13  ;;  %v5285_v12 = vld [vmem:[#allocation10 + $0x2c4] ss:$16 sps:$4 sm:$0xff]   ;;  %v5288_v13 = vld [vmem:[#allocation10 + $0x2cc] ss:$16 sps:$4 sm:$0xff]  }
 0x1ff   :  { %3785 = vmatprep.subr.bf16.mxu0 %v5213_v15  ;;  %3867 = vmatprep.subr.bf16.mxu1 %v5216_v16  ;;  %v5283_v15 = vld [vmem:[#allocation10 + $0x2c0] ss:$16 sps:$4 sm:$0xff]   ;;  %v5286_v16 = vld [vmem:[#allocation10 + $0x2c8] ss:$16 sps:$4 sm:$0xff]  }
 0x202   :  { %3786 = vmatpush1.bf16.msra.mxu0 %v5211_v18  ;;  %3868 = vmatpush1.bf16.msra.mxu1 %v5214_v20  ;;  %v5291_v18 = vld [vmem:[#allocation10 + $0x2e4] ss:$16 sps:$4 sm:$0xff]   ;;  %v5294_v20 = vld [vmem:[#allocation10 + $0x2ec] ss:$16 sps:$4 sm:$0xff]  }
 0x203   :  { %3787 = vmatprep.subr.bf16.mxu0 %v5219_v11  ;;  %3869 = vmatprep.subr.bf16.mxu1 %v5222_v21  ;;  %v5289_v11 = vld [vmem:[#allocation10 + $0x2e0] ss:$16 sps:$4 sm:$0xff]   ;;  %v5292_v21 = vld [vmem:[#allocation10 + $0x2e8] ss:$16 sps:$4 sm:$0xff]  }
 0x206   :  { %3788 = vmatpush1.bf16.msra.mxu0 %v5217_v22  ;;  %3870 = vmatpush1.bf16.msra.mxu1 %v5220_v14  ;;  %v5297_v22 = vld [vmem:[#allocation10 + $0x304] ss:$16 sps:$4 sm:$0xff]   ;;  %v5300_v14 = vld [vmem:[#allocation10 + $0x30c] ss:$16 sps:$4 sm:$0xff]  }
 0x207   :  { %3789 = vmatprep.subr.bf16.mxu0 %v5225_v23  ;;  %3871 = vmatprep.subr.bf16.mxu1 %v5228_v24  ;;  %v5295_v23 = vld [vmem:[#allocation10 + $0x300] ss:$16 sps:$4 sm:$0xff]   ;;  %v5298_v24 = vld [vmem:[#allocation10 + $0x308] ss:$16 sps:$4 sm:$0xff]  }
 0x20a   :  { %3790 = vmatpush1.bf16.msra.mxu0 %v5223_v25  ;;  %3872 = vmatpush1.bf16.msra.mxu1 %v5226_v26  ;;  %v5303_v25 = vld [vmem:[#allocation10 + $0x324] ss:$16 sps:$4 sm:$0xff]   ;;  %v5306_v26 = vld [vmem:[#allocation10 + $0x32c] ss:$16 sps:$4 sm:$0xff]  }
 0x20b   :  { %3791 = vmatprep.subr.bf16.mxu0 %v5231_v17  ;;  %3873 = vmatprep.subr.bf16.mxu1 %v5234_v28  ;;  %v5301_v17 = vld [vmem:[#allocation10 + $0x320] ss:$16 sps:$4 sm:$0xff]   ;;  %v5304_v28 = vld [vmem:[#allocation10 + $0x328] ss:$16 sps:$4 sm:$0xff]  }
 0x20e   :  { %3792 = vmatpush1.bf16.msra.mxu0 %v5229_v19  ;;  %3874 = vmatpush1.bf16.msra.mxu1 %v5232_v30  ;;  %v5309_v19 = vld [vmem:[#allocation10 + $0x344] ss:$16 sps:$4 sm:$0xff]   ;;  %v5312_v30 = vld [vmem:[#allocation10 + $0x34c] ss:$16 sps:$4 sm:$0xff]  }
 0x20f   :  { %3793 = vmatprep.subr.bf16.mxu0 %v5237_v32  ;;  %3875 = vmatprep.subr.bf16.mxu1 %v5240_v34  ;;  %v5310_v32 = vld [vmem:[#allocation10 + $0x348] ss:$16 sps:$4 sm:$0xff]   ;;  %v5315_v34 = vld [vmem:[#allocation10 + $0x364] ss:$16 sps:$4 sm:$0xff]  }
 0x212   :  { %3794 = vmatpush1.bf16.msra.mxu0 %v5235_v36  ;;  %3876 = vmatpush1.bf16.msra.mxu1 %v5238_v37  ;;  %v5313_v36 = vld [vmem:[#allocation10 + $0x360] ss:$16 sps:$4 sm:$0xff]   ;;  %v5316_v37 = vld [vmem:[#allocation10 + $0x368] ss:$16 sps:$4 sm:$0xff]  }
 0x213   :  { %3795 = vmatprep.subr.bf16.mxu0 %v5243_v38  ;;  %3877 = vmatprep.subr.bf16.mxu1 %v5246_v40  ;;  %v5324_v38 = vld [vmem:[#allocation10 + $0x38c] ss:$16 sps:$4 sm:$0xff]   ;;  %v5319_v40 = vld [vmem:[#allocation10 + $0x380] ss:$16 sps:$4 sm:$0xff]  }
 0x216   :  { %3796 = vmatpush1.bf16.msra.mxu0 %v5241_v44  ;;  %3878 = vmatpush1.bf16.msra.mxu1 %v5244_v45  ;;  %v5327_v44 = vld [vmem:[#allocation10 + $0x3a4] ss:$16 sps:$4 sm:$0xff]   ;;  %v5330_v45 = vld [vmem:[#allocation10 + $0x3ac] ss:$16 sps:$4 sm:$0xff]  }
 0x217   :  { %3806 = vmatprep.subr.bf16.mxu0 %v5249_v41  ;;  %3888 = vmatprep.subr.bf16.mxu1 %v5252_v47  ;;  %v5325_v41 = vld [vmem:[#allocation10 + $0x3a0] ss:$16 sps:$4 sm:$0xff]   ;;  %v5328_v47 = vld [vmem:[#allocation10 + $0x3a8] ss:$16 sps:$4 sm:$0xff]  }
 0x219   :  { %3798 = vmatmul.mubr.bf16.vlgmr.msra.gmra.mrb[8].mxu0 %v2993_v50  ;;  %3880 = vmatmul.mubr.bf16.vlgmr.msra.gmra.mrb[8].mxu1 %v2993_v50  ;;  %v5336_v50 = vld [vmem:[#allocation10 + $0x3cc] ss:$16 sps:$4 sm:$0xff]  }
 0x21a   :  { %3807 = vmatpush1.bf16.msra.mxu0 %v5247_v49  ;;  %3838 = vmatprep.mubr.bf16.mxu0 %v2996_v52  ;;  %v5333_v49 = vld [vmem:[#allocation10 + $0x3c4] ss:$16 sps:$4 sm:$0xff]  }
 0x21b   :  { %3889 = vmatpush1.bf16.msra.mxu1 %v5250_v51  ;;  %3920 = vmatprep.mubr.bf16.mxu1 %v2996_v52  ;;  %v5331_v51 = vld [vmem:[#allocation10 + $0x3c0] ss:$16 sps:$4 sm:$0xff]   ;;  %v5334_v52 = vld [vmem:[#allocation10 + $0x3c8] ss:$16 sps:$4 sm:$0xff]  }
 0x21c   :  { %3808 = vmatprep.subr.bf16.mxu0 %v5255_v54  ;;  %3890 = vmatprep.subr.bf16.mxu1 %v5258_v55  ;;  %v5339_v54 = vld [vmem:[#allocation10 + $0x3e4] ss:$16 sps:$4 sm:$0xff]   ;;  %v5342_v55 = vld [vmem:[#allocation10 + $0x3ec] ss:$16 sps:$4 sm:$0xff]  }
 0x21e   :  { %3809 = vmatpush1.bf16.msra.mxu0 %v5253_v56  ;;  %v5337_v56 = vld [vmem:[#allocation10 + $0x3e0] ss:$16 sps:$4 sm:$0xff]  }
 0x21f   :  { %3891 = vmatpush1.bf16.msra.mxu1 %v5256_v57  ;;  %3810 = vmatprep.subr.bf16.mxu0 %v5261_v58  ;;  %v1543_v57 = vmax.f32 %v5634_v53, 0.0  ;;  %v5340_v58 = vld [vmem:[#allocation10 + $0x3e8] ss:$16 sps:$4 sm:$0xff]   ;;  %v1740_v53 = vld [vmem:[%s5691_s5] sm:$0xf] }
 0x220   :  { %3892 = vmatprep.subr.bf16.mxu1 %v5264_v59 }
 0x221   :  { %v2995_v59 = vpack.c.bf16 %v1543_v57, %v1543_v57 }
 0x222   :  { %3811 = vmatpush1.bf16.msra.mxu0 %v5259_v60 }
 0x223   :  { %3893 = vmatpush1.bf16.msra.mxu1 %v5262_v61  ;;  %3812 = vmatprep.subr.bf16.mxu0 %v5267_v62 }
 0x224   :  { %3894 = vmatprep.subr.bf16.mxu1 %v5270_v63 }
 0x226   :  { %3813 = vmatpush1.bf16.msra.mxu0 %v5265_v0 }
 0x227   :  { %3895 = vmatpush1.bf16.msra.mxu1 %v5268_v2  ;;  %3814 = vmatprep.subr.bf16.mxu0 %v5273_v3 }
 0x228   :  { %3896 = vmatprep.subr.bf16.mxu1 %v5276_v4 }
 0x22a   :  { %3815 = vmatpush1.bf16.msra.mxu0 %v5271_v5  ;;  %v1745_v5 = vrot.slane %v1740_v53, %v5643_v27 }
 0x22b   :  { %3897 = vmatpush1.bf16.msra.mxu1 %v5274_v6  ;;  %3816 = vmatprep.subr.bf16.mxu0 %v5279_v7  ;;  %v1753_v6 = vrot.slane %v1740_v53, %v5618_v39  ;;  %v1749_v7 = vrot.slane %v1740_v53, %v5626_v42 }
 0x22c   :  { %3898 = vmatprep.subr.bf16.mxu1 %v5282_v8  ;;  %v1757_v8 = vrot.slane %v1740_v53, %v5646_v29 }
 0x22e   :  { %3817 = vmatpush1.bf16.msra.mxu0 %v5277_v9 }
 0x22f   :  { %3899 = vmatpush1.bf16.msra.mxu1 %v5280_v10  ;;  %3818 = vmatprep.subr.bf16.mxu0 %v5285_v12 }
 0x230   :  { %3900 = vmatprep.subr.bf16.mxu1 %v5288_v13 }
 0x232   :  { %3819 = vmatpush1.bf16.msra.mxu0 %v5283_v15 }
 0x233   :  { %3901 = vmatpush1.bf16.msra.mxu1 %v5286_v16  ;;  %3820 = vmatprep.subr.bf16.mxu0 %v5291_v18 }
 0x234   :  { %3902 = vmatprep.subr.bf16.mxu1 %v5294_v20  ;;  %v3938_v20 = vld [vmem:[%s5693_s7] sm:$0xf] }
 0x236   :  { %3821 = vmatpush1.bf16.msra.mxu0 %v5289_v11 }
 0x237   :  { %3903 = vmatpush1.bf16.msra.mxu1 %v5292_v21  ;;  %3822 = vmatprep.subr.bf16.mxu0 %v5297_v22  ;;  %v3943_v22 = vrot.slane %v3938_v20, %v5643_v27 }
 0x238   :  { %3904 = vmatprep.subr.bf16.mxu1 %v5300_v14 }
 0x23a   :  { %3823 = vmatpush1.bf16.msra.mxu0 %v5295_v23 }
 0x23b   :  { %3905 = vmatpush1.bf16.msra.mxu1 %v5298_v24  ;;  %3824 = vmatprep.subr.bf16.mxu0 %v5303_v25  ;;  %v3951_v24 = vrot.slane %v3938_v20, %v5618_v39  ;;  %v3947_v25 = vrot.slane %v3938_v20, %v5626_v42 }
 0x23c   :  { %3906 = vmatprep.subr.bf16.mxu1 %v5306_v26 }
 0x23e   :  { %3825 = vmatpush1.bf16.msra.mxu0 %v5301_v17  ;;  %v3955_v17 = vrot.slane %v3938_v20, %v5646_v29 }
 0x23f   :  { %3907 = vmatpush1.bf16.msra.mxu1 %v5304_v28  ;;  %3826 = vmatprep.subr.bf16.mxu0 %v5309_v19 }
 0x240   :  { %3908 = vmatprep.subr.bf16.mxu1 %v5312_v30 }
 0x242   :  { %3827 = vmatpush1.bf16.msra.mxu0 %v5307_v31 }
 0x243   :  { %3909 = vmatpush1.bf16.msra.mxu1 %v5310_v32  ;;  %3828 = vmatprep.subr.bf16.mxu0 %v5315_v34 }
 0x244   :  { %3910 = vmatprep.subr.bf16.mxu1 %v5318_v35 }
 0x246   :  { %3829 = vmatpush1.bf16.msra.mxu0 %v5313_v36 }
 0x247   :  { %3911 = vmatpush1.bf16.msra.mxu1 %v5316_v37  ;;  %3830 = vmatprep.subr.bf16.mxu0 %v5321_v33 }
 0x248   :  { %3912 = vmatprep.subr.bf16.mxu1 %v5324_v38 }
 0x24a   :  { %3831 = vmatpush1.bf16.msra.mxu0 %v5319_v40 }
 0x24b   :  { %3913 = vmatpush1.bf16.msra.mxu1 %v5322_v43  ;;  %3832 = vmatprep.subr.bf16.mxu0 %v5327_v44 }
 0x24c   :  { %3914 = vmatprep.subr.bf16.mxu1 %v5330_v45 }
 0x24e   :  { %3833 = vmatpush1.bf16.msra.mxu0 %v5325_v41 }
 0x24f   :  { %3915 = vmatpush1.bf16.msra.mxu1 %v5328_v47  ;;  %3834 = vmatprep.subr.bf16.mxu0 %v5333_v49  ;;  %v3973_v47 = vstv %s5694_s8 }
 0x250   :  { %3916 = vmatprep.subr.bf16.mxu1 %v5336_v50 }
 0x252   :  { %3835 = vmatpush1.bf16.msra.mxu0 %v5331_v51 }
 0x253   :  { %3917 = vmatpush1.bf16.msra.mxu1 %v5334_v52  ;;  %3836 = vmatprep.subr.bf16.mxu0 %v5339_v54 }
 0x254   :  { %3918 = vmatprep.subr.bf16.mxu1 %v5342_v55 }
 0x256   :  { %3837 = vmatpush1.bf16.msra.mxu0 %v5337_v56 }
 0x257   :  { %3919 = vmatpush1.bf16.msra.mxu1 %v5340_v58 }
 0x259   :  { %3839 = vmatmul.mubr.bf16.vlgmr.msra.gmra.mrb[8].mxu0 %v2995_v59 }
 0x25a   :  { %3921 = vmatmul.mubr.bf16.vlgmr.msra.gmra.mrb[8].mxu1 %v2995_v59 }
 0x2ac   :  { %v2859_v60 = vpop.f32.mrb[4].mxu0  ;;  %v2982_v61 = vpop.f32.mrb[4].mxu1 }
 0x2ad   :  { %v2861_v62 = vpop.f32.mrb[5].mxu0  ;;  %v2984_v63 = vpop.f32.mrb[5].mxu1  ;;  %v4512_v9 = vadd.f32 %v2859_v60, %v1745_v5  ;;  %v4514_v10 = vadd.f32 %v2982_v61, %v1753_v6 }
 0x2ae   :  { %v2863_v0 = vpop.f32.mrb[6].mxu0  ;;  %v2986_v2 = vpop.f32.mrb[6].mxu1  ;;  %v4513_v12 = vadd.f32 %v2861_v62, %v1749_v7  ;;  %v4515_v13 = vadd.f32 %v2984_v63, %v1757_v8 }
 0x2af   :  { %v2864_v3 = vpop.f32.mrb[7].mxu0  ;;  %v2987_v4 = vpop.f32.mrb[7].mxu1  ;;  %v2989_v15 = vmax.f32 %v4512_v9, 0.0  ;;  %v2991_v16 = vmax.f32 %v4514_v10, 0.0 }
 0x2b0   :  { %v2990_v18 = vmax.f32 %v4513_v12, 0.0  ;;  %v2992_v11 = vmax.f32 %v4515_v13, 0.0 }
 0x2b1   :  { %v3934_v21 = vadd.f32 %v2989_v15, %v5654_v46  ;;  %v3936_v14 = vadd.f32 %v2991_v16, %v1543_v57 }
 0x2b2   :  { %v3935_v23 = vadd.f32 %v2990_v18, %v5638_v1  ;;  %v3937_v26 = vadd.f32 %v2992_v11, %v5656_v48 }
 0x2b3   :  { %v3960_v30 = vmul.f32 %v3943_v22, %v3934_v21  ;;  %v3962_v46 = vmul.f32 %v3951_v24, %v3936_v14 }
 0x2b4   :  { %v3961_v27 = vmul.f32 %v3947_v25, %v3935_v23  ;;  %v3963_v42 = vmul.f32 %v3955_v17, %v3937_v26 }
 0x32c   :  { %v3840_v28 = vpop.f32.mrb[8].mxu0 }
 0x32d   :  { %v3930_v19 = vmul.f32 %v3840_v28, %v2989_v15  ;;  %v3922_v31 = vpop.f32.mrb[8].mxu1  ;;  %v3842_v32 = vpop.f32.mrb[9].mxu0 }
 0x32e   :  { %v3932_v34 = vmul.f32 %v3922_v31, %v2991_v16  ;;  %v3931_v35 = vmul.f32 %v3842_v32, %v2990_v18  ;;  %v3924_v36 = vpop.f32.mrb[9].mxu1  ;;  %v3844_v37 = vpop.f32.mrb[10].mxu0 }
 0x32f   :  { %v3964_v1 = vadd.f32 %v3960_v30, %v3930_v19  ;;  %v3933_v33 = vmul.f32 %v3924_v36, %v2992_v11  ;;  %v3926_v39 = vpop.f32.mrb[10].mxu1  ;;  %v3845_v38 = vpop.f32.mrb[11].mxu0 }
 0x330   :  { %v3966_v40 = vadd.f32 %v3962_v46, %v3932_v34  ;;  %v3965_v48 = vadd.f32 %v3961_v27, %v3931_v35  ;;  %v3927_v43 = vpop.f32.mrb[11].mxu1 }
 0x331   :  { %v3967_v29 = vadd.f32 %v3963_v42, %v3933_v33 }
 0x332   :  { %v3968_v44 = vadd.f32 %v3965_v48, %v3964_v1 }
 0x334   :  { %v3969_v45 = vadd.f32 %v3968_v44, %v3966_v40 }
 0x336   :  { %v3970_v41 = vadd.f32 %v3969_v45, %v3967_v29 }
 0x338   :  { %3971 = vadd.xlane.f32.xlu0 %v3970_v41 }
 0x3c5   :  { %v3972_v49 = vpop.xlane.xlu0 %3971 }
 0x3c6   :  { %v3974_v50 = vadd.f32 %v3973_v47, %v3972_v49 }
 0x3c8   :  { %3976 = vst.msk [vmem:[%s5695_s9] sm:$0xff] %vm3975_vm0, %v3974_v50 }
 0x3c9   :  { %3981 = vsyncpa [#allocation4], 1 }
 0x3ca   :  { %3982 = vsyncpa [#allocation6], 1 }
 0x3cb   :  { %3983 = vsyncpa [#allocation9], 1 }

</bundles_post_ra>
